<compile_context>
chip_gen: v6e
topology: v6e:2x2x1
jax: 0.10.0
libtpu: 0.0.40
codegen_flags: <defaults>
</compile_context>

<pallas_src>
import jax
import jax.numpy as jnp
from jax import lax
from jax.experimental import pallas as pl
from jax.experimental.pallas import tpu as pltpu

# ----------------------------- config (small) -------------------------------
B = 2            # number of (sentence1, sentence2) pairs
S = 8            # sequence length (stand-in for MAX_LEN=128)
BS = B * S       # batch*seq slab rows
H = 32           # hidden size
NH = 4           # attention heads
HD = H // NH     # head dim
FF = 64          # FFN intermediate size
VOCAB = 64       # vocab size (synthetic)
NUM_LABELS = 2   # sentence-pair classifier labels
NUM_LAYERS = 2   # ALBERT shares one set of layer weights across layers
EPS = 1e-12
LOGIT_PAD = 128  # lane-dense padded logits / bias-slab width
TPAD = 8         # token-type one-hot rows padded to a sublane tile

# ---- packed embedding-table slab (f32, (TAB_ROWS, H)) row layout ----
TAB_ROWS = VOCAB + TPAD + S       # word | type(pad to 8) | position

# ---- packed bias/LN slab (f32, (BIAS_ROWS, 128)) row layout ----
R_EMB_G, R_EMB_B = 0, 1
R_BQKV = 2                         # lanes 0:3H
R_BO = 3
R_LN1G, R_LN1B = 4, 5
R_B1 = 6                           # lanes 0:FF
R_B2 = 7
R_LN2G, R_LN2B = 8, 9
R_BP = 10
R_BC = 11                          # lanes 0:NUM_LABELS
BIAS_ROWS = 16

# ---- packed bf16 weight slab ((W_ROWS, 128)) sublane-row layout ----
W_QKV = 0        # rows 0:32,    lanes 0:3H   (wq|wk|wv)
W_O = 32         # rows 32:64,   lanes 0:H
W_1 = 64         # rows 64:96,   lanes 0:FF
W_2 = 96         # rows 96:160,  lanes 0:H
W_P = 160        # rows 160:192, lanes 0:H
W_C = 192        # rows 192:224, lanes 0:LOGIT_PAD (classifier, padded)
W_ROWS = 224


def _layernorm(x, g, b):
    mu = jnp.mean(x, axis=-1, keepdims=True)
    var = jnp.mean((x - mu) ** 2, axis=-1, keepdims=True)
    return (x - mu) * lax.rsqrt(var + EPS) * g + b


# --------------------------- fused Pallas kernel ------------------------------
def fused_bert_kernel(ids_ref, tt_ref, mask_ref, tab_ref, bias_ref, wt_ref,
                      out_ref):
    ids = ids_ref[...]                  # (1, BS) int32, lane-dense
    tt = tt_ref[...]                    # (1, BS) int32, lane-dense
    mask_add = mask_ref[...]            # (BS, BS) f32 additive mask
                                        # (batch block-diag + key padding)

    # ---- embeddings: word + token-type + position in ONE stacked one-hot
    #      matmul against the packed table (transposed one-hot, MXU dot) ----
    word_oh = (ids == lax.broadcasted_iota(jnp.int32, (VOCAB, BS), 0)
               ).astype(jnp.float32)                               # (VOCAB, BS)
    type_oh = (tt == lax.broadcasted_iota(jnp.int32, (TPAD, BS), 0)
               ).astype(jnp.float32)                               # (TPAD, BS)
    pos_oh = (lax.broadcasted_iota(jnp.int32, (S, BS), 1) % S
              == lax.broadcasted_iota(jnp.int32, (S, BS), 0)
              ).astype(jnp.float32)                                # (S, BS)
    oh = jnp.concatenate([word_oh, type_oh, pos_oh], axis=0)       # (TAB_ROWS, BS)
    emb = lax.dot_general(oh, tab_ref[...], (((0,), (0,)), ((), ())),
                          preferred_element_type=jnp.float32)      # (BS, H)

    x = _layernorm(emb,
                   bias_ref[R_EMB_G:R_EMB_G + 1, :H],
                   bias_ref[R_EMB_B:R_EMB_B + 1, :H])

    scale = 1.0 / (HD ** 0.5)

    def layer(_, xc):
        xb = xc.astype(jnp.bfloat16)
        # fused QKV: one (BS,H) x (H,128) bf16 matmul; lanes [0,3H) = q|k|v
        qkv = jnp.dot(xb, wt_ref[W_QKV:W_QKV + H, :],
                      preferred_element_type=jnp.float32) \
            + bias_ref[R_BQKV:R_BQKV + 1, :]                        # (BS, 128)

        # per-head attention with plain 2-D dots (no 3-D einsum relayouts)
        ctx_heads = []
        for h in range(NH):
            qh = qkv[:, h * HD:(h + 1) * HD].astype(jnp.bfloat16)
            kh = qkv[:, H + h * HD:H + (h + 1) * HD].astype(jnp.bfloat16)
            vh = qkv[:, 2 * H + h * HD:2 * H + (h + 1) * HD].astype(jnp.bfloat16)
            s = lax.dot_general(qh, kh, (((1,), (1,)), ((), ())),
                                preferred_element_type=jnp.float32)  # (BS, BS)
            s = s * scale + mask_add
            m = jnp.max(s, axis=-1, keepdims=True)
            e = jnp.exp(s - m)
            p = e * pl.reciprocal(jnp.sum(e, axis=-1, keepdims=True), approx=True)
            ctx_heads.append(jnp.dot(p.astype(jnp.bfloat16), vh,
                                     preferred_element_type=jnp.float32))
        ctx = jnp.concatenate(ctx_heads, axis=-1)                   # (BS, H)

        attn = jnp.dot(ctx.astype(jnp.bfloat16), wt_ref[W_O:W_O + H, :H],
                       preferred_element_type=jnp.float32) \
            + bias_ref[R_BO:R_BO + 1, :H]
        x1 = _layernorm(xc + attn,
                        bias_ref[R_LN1G:R_LN1G + 1, :H],
                        bias_ref[R_LN1B:R_LN1B + 1, :H])

        hmid = jnp.dot(x1.astype(jnp.bfloat16), wt_ref[W_1:W_1 + H, :FF],
                       preferred_element_type=jnp.float32) \
            + bias_ref[R_B1:R_B1 + 1, :FF]
        hmid = jax.nn.gelu(hmid, approximate=True)
        ffn = jnp.dot(hmid.astype(jnp.bfloat16), wt_ref[W_2:W_2 + FF, :H],
                      preferred_element_type=jnp.float32) \
            + bias_ref[R_B2:R_B2 + 1, :H]
        return _layernorm(x1 + ffn,
                          bias_ref[R_LN2G:R_LN2G + 1, :H],
                          bias_ref[R_LN2B:R_LN2B + 1, :H])

    x = lax.fori_loop(0, NUM_LAYERS, layer, x, unroll=True)

    # ---- pooler (tanh on each batch element's CLS row) + classifier ----
    cls = jnp.concatenate([x[b * S:b * S + 1, :] for b in range(B)], axis=0)  # (B, H)
    pooled = jnp.tanh(jnp.dot(cls.astype(jnp.bfloat16), wt_ref[W_P:W_P + H, :H],
                              preferred_element_type=jnp.float32)
                      + bias_ref[R_BP:R_BP + 1, :H])
    logits = jnp.dot(pooled.astype(jnp.bfloat16), wt_ref[W_C:W_C + H, :],
                     preferred_element_type=jnp.float32) \
        + bias_ref[R_BC:R_BC + 1, :]                               # (B, 128)
    out_ref[...] = logits


# --------------------------- wrapper / assembly -------------------------------
def init_params(key):
    ks = jax.random.split(key, 16)
    w = lambda k, shape: (jax.random.normal(k, shape, jnp.float32) * 0.02)
    return dict(
        word_emb=w(ks[0], (VOCAB, H)),
        pos_emb=w(ks[1], (S, H)),
        type_emb=w(ks[2], (2, H)),
        emb_ln_g=jnp.ones((H,), jnp.float32),
        emb_ln_b=jnp.zeros((H,), jnp.float32),
        # shared (ALBERT-style) encoder layer
        wq=w(ks[3], (H, H)), bq=jnp.zeros((H,), jnp.float32),
        wk=w(ks[4], (H, H)), bk=jnp.zeros((H,), jnp.float32),
        wv=w(ks[5], (H, H)), bv=jnp.zeros((H,), jnp.float32),
        wo=w(ks[6], (H, H)), bo=jnp.zeros((H,), jnp.float32),
        ln1_g=jnp.ones((H,), jnp.float32), ln1_b=jnp.zeros((H,), jnp.float32),
        w1=w(ks[7], (H, FF)), b1=jnp.zeros((FF,), jnp.float32),
        w2=w(ks[8], (FF, H)), b2=jnp.zeros((H,), jnp.float32),
        ln2_g=jnp.ones((H,), jnp.float32), ln2_b=jnp.zeros((H,), jnp.float32),
        # pooler + classifier head
        wp=w(ks[9], (H, H)), bp=jnp.zeros((H,), jnp.float32),
        wc=w(ks[10], (H, NUM_LABELS)), bc=jnp.zeros((NUM_LABELS,), jnp.float32),
    )


def pack_params(p):
    # f32 embedding-table slab: word | token-type (padded) | position
    tab = jnp.zeros((TAB_ROWS, H), jnp.float32)
    tab = tab.at[0:VOCAB].set(p['word_emb'])
    tab = tab.at[VOCAB:VOCAB + 2].set(p['type_emb'])
    tab = tab.at[VOCAB + TPAD:VOCAB + TPAD + S].set(p['pos_emb'])

    # f32 bias / LayerNorm slab, one lane-dense (128-wide) row per parameter
    bias = jnp.zeros((BIAS_ROWS, LOGIT_PAD), jnp.float32)
    put = lambda b, r, v: b.at[r, :v.shape[0]].set(v)
    bias = put(bias, R_EMB_G, p['emb_ln_g']); bias = put(bias, R_EMB_B, p['emb_ln_b'])
    bias = put(bias, R_BQKV, jnp.concatenate([p['bq'], p['bk'], p['bv']]))
    bias = put(bias, R_BO, p['bo'])
    bias = put(bias, R_LN1G, p['ln1_g']); bias = put(bias, R_LN1B, p['ln1_b'])
    bias = put(bias, R_B1, p['b1']); bias = put(bias, R_B2, p['b2'])
    bias = put(bias, R_LN2G, p['ln2_g']); bias = put(bias, R_LN2B, p['ln2_b'])
    bias = put(bias, R_BP, p['bp']); bias = put(bias, R_BC, p['bc'])

    # bf16 weight slab, every matrix zero-padded to 128 lanes, stacked on sublanes
    wt = jnp.zeros((W_ROWS, LOGIT_PAD), jnp.float32)
    wt = wt.at[W_QKV:W_QKV + H, 0:3 * H].set(
        jnp.concatenate([p['wq'], p['wk'], p['wv']], axis=1))
    wt = wt.at[W_O:W_O + H, 0:H].set(p['wo'])
    wt = wt.at[W_1:W_1 + H, 0:FF].set(p['w1'])
    wt = wt.at[W_2:W_2 + FF, 0:H].set(p['w2'])
    wt = wt.at[W_P:W_P + H, 0:H].set(p['wp'])
    wt = wt.at[W_C:W_C + H, 0:NUM_LABELS].set(p['wc'])
    return tab, bias, wt.astype(jnp.bfloat16)


def bert_forward(p, input_ids, token_type_ids, attention_mask):
    tab, bias, wt = pack_params(p)

    ids2d = input_ids.astype(jnp.int32).reshape(1, BS)        # lane-dense ids
    tt2d = token_type_ids.astype(jnp.int32).reshape(1, BS)

    # combined additive mask: block-diagonal over batch + key-padding mask
    tok_batch = jnp.arange(BS) // S
    same_batch = tok_batch[:, None] == tok_batch[None, :]
    key_ok = attention_mask.astype(jnp.float32).reshape(BS)[None, :] > 0.5
    mask_add = jnp.where(same_batch & key_ok, 0.0, -1e9).astype(jnp.float32)

    out = pl.pallas_call(
        fused_bert_kernel,
        out_shape=jax.ShapeDtypeStruct((B, LOGIT_PAD), jnp.float32),
    )(ids2d, tt2d, mask_add, tab, bias, wt)

    logits = out[:, :NUM_LABELS]
    # torch.max(outputs[0], dim=1) -> indices
    return jnp.argmax(logits, axis=1)


# TODO(synk): BertTokenizerFast tokenization and torch.load checkpoint loading
# have no Pallas equivalent; token ids / masks / weights are synthesized instead.

if __name__ == "__main__":
    key = jax.random.PRNGKey(0)
    k_param, k_ids = jax.random.split(key)
    params = init_params(k_param)

    # synthetic tokenizer output for B sentence pairs of length S
    input_ids = jax.random.randint(k_ids, (B, S), 0, VOCAB, dtype=jnp.int32)
    token_type_ids = jnp.concatenate(
        [jnp.zeros((B, S // 2), jnp.int32), jnp.ones((B, S // 2), jnp.int32)],
        axis=1)
    attention_mask = jnp.concatenate(
        [jnp.ones((B, S - 2), jnp.float32), jnp.zeros((B, 2), jnp.float32)],
        axis=1)

    forward = jax.jit(bert_forward)
    results = forward(params, input_ids, token_type_ids, attention_mask)
    jax.block_until_ready(results)
    assert results.shape == (B,)
    print("KERNEL_OK")
</pallas_src>

<mosaic_0001>
module attributes {stable_mosaic.version = 11 : i64} {
  func.func @fused_bert_kernel(%arg0: memref<1x16xi32, #tpu.memory_space<vmem>>, %arg1: memref<1x16xi32, #tpu.memory_space<vmem>>, %arg2: memref<16x16xf32, #tpu.memory_space<vmem>>, %arg3: memref<80x32xf32, #tpu.memory_space<vmem>>, %arg4: memref<16x128xf32, #tpu.memory_space<vmem>>, %arg5: memref<224x128xbf16, #tpu.memory_space<vmem>>, %arg6: memref<2x128xf32, #tpu.memory_space<vmem>>) attributes {dimension_semantics = [], scalar_prefetch = 0 : i64, scratch_operands = 0 : i64, tpu.core_type = #tpu.core_type<tc>} {
    %c0 = arith.constant 0 : index
    %c0_0 = arith.constant 0 : index
    %0 = vector.load %arg0[%c0, %c0_0] : memref<1x16xi32, #tpu.memory_space<vmem>>, vector<1x16xi32>
    %c0_1 = arith.constant 0 : index
    %c0_2 = arith.constant 0 : index
    %1 = vector.load %arg1[%c0_1, %c0_2] : memref<1x16xi32, #tpu.memory_space<vmem>>, vector<1x16xi32>
    %c0_3 = arith.constant 0 : index
    %c0_4 = arith.constant 0 : index
    %2 = vector.load %arg2[%c0_3, %c0_4] : memref<16x16xf32, #tpu.memory_space<vmem>>, vector<16x16xf32>
    %3 = tpu.iota {dimensions = array<i32: 0>} : vector<64x16xi32>
    %4 = vector.broadcast %0 : vector<1x16xi32> to vector<64x16xi32>
    %5 = arith.cmpi eq, %4, %3 : vector<64x16xi32>
    %6 = arith.extui %5 : vector<64x16xi1> to vector<64x16xi32>
    %7 = arith.sitofp %6 : vector<64x16xi32> to vector<64x16xf32>
    %8 = tpu.iota {dimensions = array<i32: 0>} : vector<8x16xi32>
    %9 = vector.broadcast %1 : vector<1x16xi32> to vector<8x16xi32>
    %10 = arith.cmpi eq, %9, %8 : vector<8x16xi32>
    %11 = arith.extui %10 : vector<8x16xi1> to vector<8x16xi32>
    %12 = arith.sitofp %11 : vector<8x16xi32> to vector<8x16xf32>
    %13 = tpu.iota {dimensions = array<i32: 1>} : vector<8x16xi32>
    %c8_i32 = arith.constant 8 : i32
    %c0_i32 = arith.constant 0 : i32
    %14 = arith.cmpi eq, %c8_i32, %c0_i32 : i32
    %c1_i32 = arith.constant 1 : i32
    %15 = arith.select %14, %c1_i32, %c8_i32 : i32
    %16 = vector.broadcast %15 : i32 to vector<8x16xi32>
    %17 = arith.remsi %13, %16 : vector<8x16xi32>
    %c0_i32_5 = arith.constant 0 : i32
    %18 = vector.broadcast %c0_i32_5 : i32 to vector<8x16xi32>
    %19 = arith.cmpi ne, %17, %18 : vector<8x16xi32>
    %c0_i32_6 = arith.constant 0 : i32
    %20 = vector.broadcast %c0_i32_6 : i32 to vector<8x16xi32>
    %21 = arith.cmpi slt, %17, %20 : vector<8x16xi32>
    %c0_i32_7 = arith.constant 0 : i32
    %22 = arith.cmpi slt, %15, %c0_i32_7 : i32
    %23 = vector.broadcast %22 : i1 to vector<8x16xi1>
    %24 = vector.broadcast %23 : vector<8x16xi1> to vector<8x16xi1>
    %25 = arith.xori %21, %24 : vector<8x16xi1>
    %26 = arith.andi %25, %19 : vector<8x16xi1>
    %27 = vector.broadcast %15 : i32 to vector<8x16xi32>
    %28 = arith.addi %17, %27 : vector<8x16xi32>
    %29 = arith.select %26, %28, %17 : vector<8x16xi1>, vector<8x16xi32>
    %30 = tpu.iota {dimensions = array<i32: 0>} : vector<8x16xi32>
    %31 = arith.cmpi eq, %29, %30 : vector<8x16xi32>
    %32 = arith.extui %31 : vector<8x16xi1> to vector<8x16xi32>
    %33 = arith.sitofp %32 : vector<8x16xi32> to vector<8x16xf32>
    %34 = tpu.concatenate %7, %12, %33 in 0 : vector<64x16xf32>, vector<8x16xf32>, vector<8x16xf32> -> vector<80x16xf32>
    %c0_8 = arith.constant 0 : index
    %c0_9 = arith.constant 0 : index
    %35 = vector.load %arg3[%c0_8, %c0_9] : memref<80x32xf32, #tpu.memory_space<vmem>>, vector<80x32xf32>
    %cst = arith.constant dense<0.000000e+00> : vector<16x32xf32>
    %36 = tpu.matmul %34, %35, %cst {dimension_numbers = #tpu.dot_dimension_numbers<[0], [0], [1], [1], [0, 1, 1, 1], [], []>} : vector<80x16xf32>, vector<80x32xf32>, vector<16x32xf32> -> vector<16x32xf32>
    %c0_10 = arith.constant 0 : index
    %c0_11 = arith.constant 0 : index
    %37 = vector.load %arg4[%c0_10, %c0_11] : memref<16x128xf32, #tpu.memory_space<vmem>>, vector<1x32xf32>
    %c1 = arith.constant 1 : index
    %c0_12 = arith.constant 0 : index
    %38 = vector.load %arg4[%c1, %c0_12] : memref<16x128xf32, #tpu.memory_space<vmem>>, vector<1x32xf32>
    %cst_13 = arith.constant dense<0.000000e+00> : vector<16xf32>
    %39 = vector.multi_reduction <add>, %36, %cst_13 [1] : vector<16x32xf32> to vector<16xf32>
    %40 = vector.shape_cast %39 : vector<16xf32> to vector<16x1xf32>
    %cst_14 = arith.constant 3.200000e+01 : f32
    %41 = vector.broadcast %cst_14 : f32 to vector<16x1xf32>
    %42 = arith.divf %40, %41 : vector<16x1xf32>
    %43 = vector.broadcast %42 : vector<16x1xf32> to vector<16x32xf32>
    %44 = arith.subf %36, %43 : vector<16x32xf32>
    %45 = arith.mulf %44, %44 : vector<16x32xf32>
    %cst_15 = arith.constant dense<0.000000e+00> : vector<16xf32>
    %46 = vector.multi_reduction <add>, %45, %cst_15 [1] : vector<16x32xf32> to vector<16xf32>
    %47 = vector.shape_cast %46 : vector<16xf32> to vector<16x1xf32>
    %cst_16 = arith.constant 3.200000e+01 : f32
    %48 = vector.broadcast %cst_16 : f32 to vector<16x1xf32>
    %49 = arith.divf %47, %48 : vector<16x1xf32>
    %50 = vector.broadcast %42 : vector<16x1xf32> to vector<16x32xf32>
    %51 = arith.subf %36, %50 : vector<16x32xf32>
    %cst_17 = arith.constant 9.99999996E-13 : f32
    %52 = vector.broadcast %cst_17 : f32 to vector<16x1xf32>
    %53 = arith.addf %49, %52 : vector<16x1xf32>
    %54 = math.rsqrt %53 : vector<16x1xf32>
    %55 = vector.broadcast %54 : vector<16x1xf32> to vector<16x32xf32>
    %56 = arith.mulf %51, %55 : vector<16x32xf32>
    %57 = vector.broadcast %37 : vector<1x32xf32> to vector<16x32xf32>
    %58 = arith.mulf %56, %57 : vector<16x32xf32>
    %59 = vector.broadcast %38 : vector<1x32xf32> to vector<16x32xf32>
    %60 = arith.addf %58, %59 : vector<16x32xf32>
    %c0_i32_18 = arith.constant 0 : i32
    %61 = arith.truncf %60 : vector<16x32xf32> to vector<16x32xbf16>
    %c0_19 = arith.constant 0 : index
    %c0_20 = arith.constant 0 : index
    %62 = vector.load %arg5[%c0_19, %c0_20] : memref<224x128xbf16, #tpu.memory_space<vmem>>, vector<32x128xbf16>
    %cst_21 = arith.constant dense<0.000000e+00> : vector<16x128xf32>
    %63 = tpu.matmul %61, %62, %cst_21 {dimension_numbers = #tpu.dot_dimension_numbers<[1], [0], [0], [1], [0, 0, 1, 1], [], []>} : vector<16x32xbf16>, vector<32x128xbf16>, vector<16x128xf32> -> vector<16x128xf32>
    %c2 = arith.constant 2 : index
    %c0_22 = arith.constant 0 : index
    %64 = vector.load %arg4[%c2, %c0_22] : memref<16x128xf32, #tpu.memory_space<vmem>>, vector<1x128xf32>
    %65 = vector.broadcast %64 : vector<1x128xf32> to vector<16x128xf32>
    %66 = arith.addf %63, %65 : vector<16x128xf32>
    %67 = vector.extract_strided_slice %66 {offsets = [0, 0], sizes = [16, 8], strides = [1, 1]} : vector<16x128xf32> to vector<16x8xf32>
    %68 = arith.truncf %67 : vector<16x8xf32> to vector<16x8xbf16>
    %69 = vector.extract_strided_slice %66 {offsets = [0, 32], sizes = [16, 8], strides = [1, 1]} : vector<16x128xf32> to vector<16x8xf32>
    %70 = arith.truncf %69 : vector<16x8xf32> to vector<16x8xbf16>
    %71 = vector.extract_strided_slice %66 {offsets = [0, 64], sizes = [16, 8], strides = [1, 1]} : vector<16x128xf32> to vector<16x8xf32>
    %72 = arith.truncf %71 : vector<16x8xf32> to vector<16x8xbf16>
    %cst_23 = arith.constant dense<0.000000e+00> : vector<16x16xf32>
    %73 = tpu.matmul %68, %70, %cst_23 {dimension_numbers = #tpu.dot_dimension_numbers<[1], [1], [0], [0], [0, 0, 1, 0], [], []>} : vector<16x8xbf16>, vector<16x8xbf16>, vector<16x16xf32> -> vector<16x16xf32>
    %cst_24 = arith.constant 0.353553385 : f32
    %74 = vector.broadcast %cst_24 : f32 to vector<16x16xf32>
    %75 = arith.mulf %73, %74 : vector<16x16xf32>
    %76 = arith.addf %75, %2 : vector<16x16xf32>
    %cst_25 = arith.constant dense<0xFF800000> : vector<16xf32>
    %77 = vector.multi_reduction <maximumf>, %76, %cst_25 [1] : vector<16x16xf32> to vector<16xf32>
    %78 = vector.shape_cast %77 : vector<16xf32> to vector<16x1xf32>
    %79 = vector.broadcast %78 : vector<16x1xf32> to vector<16x16xf32>
    %80 = arith.subf %76, %79 : vector<16x16xf32>
    %81 = math.exp %80 : vector<16x16xf32>
    %cst_26 = arith.constant dense<0.000000e+00> : vector<16xf32>
    %82 = vector.multi_reduction <add>, %81, %cst_26 [1] : vector<16x16xf32> to vector<16xf32>
    %83 = vector.shape_cast %82 : vector<16xf32> to vector<16x1xf32>
    %84 = tpu.reciprocal %83 {approx = true} : vector<16x1xf32> -> vector<16x1xf32>
    %85 = vector.broadcast %84 : vector<16x1xf32> to vector<16x16xf32>
    %86 = arith.mulf %81, %85 : vector<16x16xf32>
    %87 = arith.truncf %86 : vector<16x16xf32> to vector<16x16xbf16>
    %cst_27 = arith.constant dense<0.000000e+00> : vector<16x8xf32>
    %88 = tpu.matmul %87, %72, %cst_27 {dimension_numbers = #tpu.dot_dimension_numbers<[1], [0], [0], [1], [0, 0, 1, 1], [], []>} : vector<16x16xbf16>, vector<16x8xbf16>, vector<16x8xf32> -> vector<16x8xf32>
    %89 = vector.extract_strided_slice %66 {offsets = [0, 8], sizes = [16, 8], strides = [1, 1]} : vector<16x128xf32> to vector<16x8xf32>
    %90 = arith.truncf %89 : vector<16x8xf32> to vector<16x8xbf16>
    %91 = vector.extract_strided_slice %66 {offsets = [0, 40], sizes = [16, 8], strides = [1, 1]} : vector<16x128xf32> to vector<16x8xf32>
    %92 = arith.truncf %91 : vector<16x8xf32> to vector<16x8xbf16>
    %93 = vector.extract_strided_slice %66 {offsets = [0, 72], sizes = [16, 8], strides = [1, 1]} : vector<16x128xf32> to vector<16x8xf32>
    %94 = arith.truncf %93 : vector<16x8xf32> to vector<16x8xbf16>
    %cst_28 = arith.constant dense<0.000000e+00> : vector<16x16xf32>
    %95 = tpu.matmul %90, %92, %cst_28 {dimension_numbers = #tpu.dot_dimension_numbers<[1], [1], [0], [0], [0, 0, 1, 0], [], []>} : vector<16x8xbf16>, vector<16x8xbf16>, vector<16x16xf32> -> vector<16x16xf32>
    %cst_29 = arith.constant 0.353553385 : f32
    %96 = vector.broadcast %cst_29 : f32 to vector<16x16xf32>
    %97 = arith.mulf %95, %96 : vector<16x16xf32>
    %98 = arith.addf %97, %2 : vector<16x16xf32>
    %cst_30 = arith.constant dense<0xFF800000> : vector<16xf32>
    %99 = vector.multi_reduction <maximumf>, %98, %cst_30 [1] : vector<16x16xf32> to vector<16xf32>
    %100 = vector.shape_cast %99 : vector<16xf32> to vector<16x1xf32>
    %101 = vector.broadcast %100 : vector<16x1xf32> to vector<16x16xf32>
    %102 = arith.subf %98, %101 : vector<16x16xf32>
    %103 = math.exp %102 : vector<16x16xf32>
    %cst_31 = arith.constant dense<0.000000e+00> : vector<16xf32>
    %104 = vector.multi_reduction <add>, %103, %cst_31 [1] : vector<16x16xf32> to vector<16xf32>
    %105 = vector.shape_cast %104 : vector<16xf32> to vector<16x1xf32>
    %106 = tpu.reciprocal %105 {approx = true} : vector<16x1xf32> -> vector<16x1xf32>
    %107 = vector.broadcast %106 : vector<16x1xf32> to vector<16x16xf32>
    %108 = arith.mulf %103, %107 : vector<16x16xf32>
    %109 = arith.truncf %108 : vector<16x16xf32> to vector<16x16xbf16>
    %cst_32 = arith.constant dense<0.000000e+00> : vector<16x8xf32>
    %110 = tpu.matmul %109, %94, %cst_32 {dimension_numbers = #tpu.dot_dimension_numbers<[1], [0], [0], [1], [0, 0, 1, 1], [], []>} : vector<16x16xbf16>, vector<16x8xbf16>, vector<16x8xf32> -> vector<16x8xf32>
    %111 = vector.extract_strided_slice %66 {offsets = [0, 16], sizes = [16, 8], strides = [1, 1]} : vector<16x128xf32> to vector<16x8xf32>
    %112 = arith.truncf %111 : vector<16x8xf32> to vector<16x8xbf16>
    %113 = vector.extract_strided_slice %66 {offsets = [0, 48], sizes = [16, 8], strides = [1, 1]} : vector<16x128xf32> to vector<16x8xf32>
    %114 = arith.truncf %113 : vector<16x8xf32> to vector<16x8xbf16>
    %115 = vector.extract_strided_slice %66 {offsets = [0, 80], sizes = [16, 8], strides = [1, 1]} : vector<16x128xf32> to vector<16x8xf32>
    %116 = arith.truncf %115 : vector<16x8xf32> to vector<16x8xbf16>
    %cst_33 = arith.constant dense<0.000000e+00> : vector<16x16xf32>
    %117 = tpu.matmul %112, %114, %cst_33 {dimension_numbers = #tpu.dot_dimension_numbers<[1], [1], [0], [0], [0, 0, 1, 0], [], []>} : vector<16x8xbf16>, vector<16x8xbf16>, vector<16x16xf32> -> vector<16x16xf32>
    %cst_34 = arith.constant 0.353553385 : f32
    %118 = vector.broadcast %cst_34 : f32 to vector<16x16xf32>
    %119 = arith.mulf %117, %118 : vector<16x16xf32>
    %120 = arith.addf %119, %2 : vector<16x16xf32>
    %cst_35 = arith.constant dense<0xFF800000> : vector<16xf32>
    %121 = vector.multi_reduction <maximumf>, %120, %cst_35 [1] : vector<16x16xf32> to vector<16xf32>
    %122 = vector.shape_cast %121 : vector<16xf32> to vector<16x1xf32>
    %123 = vector.broadcast %122 : vector<16x1xf32> to vector<16x16xf32>
    %124 = arith.subf %120, %123 : vector<16x16xf32>
    %125 = math.exp %124 : vector<16x16xf32>
    %cst_36 = arith.constant dense<0.000000e+00> : vector<16xf32>
    %126 = vector.multi_reduction <add>, %125, %cst_36 [1] : vector<16x16xf32> to vector<16xf32>
    %127 = vector.shape_cast %126 : vector<16xf32> to vector<16x1xf32>
    %128 = tpu.reciprocal %127 {approx = true} : vector<16x1xf32> -> vector<16x1xf32>
    %129 = vector.broadcast %128 : vector<16x1xf32> to vector<16x16xf32>
    %130 = arith.mulf %125, %129 : vector<16x16xf32>
    %131 = arith.truncf %130 : vector<16x16xf32> to vector<16x16xbf16>
    %cst_37 = arith.constant dense<0.000000e+00> : vector<16x8xf32>
    %132 = tpu.matmul %131, %116, %cst_37 {dimension_numbers = #tpu.dot_dimension_numbers<[1], [0], [0], [1], [0, 0, 1, 1], [], []>} : vector<16x16xbf16>, vector<16x8xbf16>, vector<16x8xf32> -> vector<16x8xf32>
    %133 = vector.extract_strided_slice %66 {offsets = [0, 24], sizes = [16, 8], strides = [1, 1]} : vector<16x128xf32> to vector<16x8xf32>
    %134 = arith.truncf %133 : vector<16x8xf32> to vector<16x8xbf16>
    %135 = vector.extract_strided_slice %66 {offsets = [0, 56], sizes = [16, 8], strides = [1, 1]} : vector<16x128xf32> to vector<16x8xf32>
    %136 = arith.truncf %135 : vector<16x8xf32> to vector<16x8xbf16>
    %137 = vector.extract_strided_slice %66 {offsets = [0, 88], sizes = [16, 8], strides = [1, 1]} : vector<16x128xf32> to vector<16x8xf32>
    %138 = arith.truncf %137 : vector<16x8xf32> to vector<16x8xbf16>
    %cst_38 = arith.constant dense<0.000000e+00> : vector<16x16xf32>
    %139 = tpu.matmul %134, %136, %cst_38 {dimension_numbers = #tpu.dot_dimension_numbers<[1], [1], [0], [0], [0, 0, 1, 0], [], []>} : vector<16x8xbf16>, vector<16x8xbf16>, vector<16x16xf32> -> vector<16x16xf32>
    %cst_39 = arith.constant 0.353553385 : f32
    %140 = vector.broadcast %cst_39 : f32 to vector<16x16xf32>
    %141 = arith.mulf %139, %140 : vector<16x16xf32>
    %142 = arith.addf %141, %2 : vector<16x16xf32>
    %cst_40 = arith.constant dense<0xFF800000> : vector<16xf32>
    %143 = vector.multi_reduction <maximumf>, %142, %cst_40 [1] : vector<16x16xf32> to vector<16xf32>
    %144 = vector.shape_cast %143 : vector<16xf32> to vector<16x1xf32>
    %145 = vector.broadcast %144 : vector<16x1xf32> to vector<16x16xf32>
    %146 = arith.subf %142, %145 : vector<16x16xf32>
    %147 = math.exp %146 : vector<16x16xf32>
    %cst_41 = arith.constant dense<0.000000e+00> : vector<16xf32>
    %148 = vector.multi_reduction <add>, %147, %cst_41 [1] : vector<16x16xf32> to vector<16xf32>
    %149 = vector.shape_cast %148 : vector<16xf32> to vector<16x1xf32>
    %150 = tpu.reciprocal %149 {approx = true} : vector<16x1xf32> -> vector<16x1xf32>
    %151 = vector.broadcast %150 : vector<16x1xf32> to vector<16x16xf32>
    %152 = arith.mulf %147, %151 : vector<16x16xf32>
    %153 = arith.truncf %152 : vector<16x16xf32> to vector<16x16xbf16>
    %cst_42 = arith.constant dense<0.000000e+00> : vector<16x8xf32>
    %154 = tpu.matmul %153, %138, %cst_42 {dimension_numbers = #tpu.dot_dimension_numbers<[1], [0], [0], [1], [0, 0, 1, 1], [], []>} : vector<16x16xbf16>, vector<16x8xbf16>, vector<16x8xf32> -> vector<16x8xf32>
    %155 = tpu.concatenate %88, %110, %132, %154 in 1 : vector<16x8xf32>, vector<16x8xf32>, vector<16x8xf32>, vector<16x8xf32> -> vector<16x32xf32>
    %156 = arith.truncf %155 : vector<16x32xf32> to vector<16x32xbf16>
    %c32 = arith.constant 32 : index
    %c0_43 = arith.constant 0 : index
    %157 = vector.load %arg5[%c32, %c0_43] : memref<224x128xbf16, #tpu.memory_space<vmem>>, vector<32x32xbf16>
    %cst_44 = arith.constant dense<0.000000e+00> : vector<16x32xf32>
    %158 = tpu.matmul %156, %157, %cst_44 {dimension_numbers = #tpu.dot_dimension_numbers<[1], [0], [0], [1], [0, 0, 1, 1], [], []>} : vector<16x32xbf16>, vector<32x32xbf16>, vector<16x32xf32> -> vector<16x32xf32>
    %c3 = arith.constant 3 : index
    %c0_45 = arith.constant 0 : index
    %159 = vector.load %arg4[%c3, %c0_45] : memref<16x128xf32, #tpu.memory_space<vmem>>, vector<1x32xf32>
    %160 = vector.broadcast %159 : vector<1x32xf32> to vector<16x32xf32>
    %161 = arith.addf %158, %160 : vector<16x32xf32>
    %162 = arith.addf %60, %161 : vector<16x32xf32>
    %c4 = arith.constant 4 : index
    %c0_46 = arith.constant 0 : index
    %163 = vector.load %arg4[%c4, %c0_46] : memref<16x128xf32, #tpu.memory_space<vmem>>, vector<1x32xf32>
    %c5 = arith.constant 5 : index
    %c0_47 = arith.constant 0 : index
    %164 = vector.load %arg4[%c5, %c0_47] : memref<16x128xf32, #tpu.memory_space<vmem>>, vector<1x32xf32>
    %cst_48 = arith.constant dense<0.000000e+00> : vector<16xf32>
    %165 = vector.multi_reduction <add>, %162, %cst_48 [1] : vector<16x32xf32> to vector<16xf32>
    %166 = vector.shape_cast %165 : vector<16xf32> to vector<16x1xf32>
    %cst_49 = arith.constant 3.200000e+01 : f32
    %167 = vector.broadcast %cst_49 : f32 to vector<16x1xf32>
    %168 = arith.divf %166, %167 : vector<16x1xf32>
    %169 = vector.broadcast %168 : vector<16x1xf32> to vector<16x32xf32>
    %170 = arith.subf %162, %169 : vector<16x32xf32>
    %171 = arith.mulf %170, %170 : vector<16x32xf32>
    %cst_50 = arith.constant dense<0.000000e+00> : vector<16xf32>
    %172 = vector.multi_reduction <add>, %171, %cst_50 [1] : vector<16x32xf32> to vector<16xf32>
    %173 = vector.shape_cast %172 : vector<16xf32> to vector<16x1xf32>
    %cst_51 = arith.constant 3.200000e+01 : f32
    %174 = vector.broadcast %cst_51 : f32 to vector<16x1xf32>
    %175 = arith.divf %173, %174 : vector<16x1xf32>
    %176 = vector.broadcast %168 : vector<16x1xf32> to vector<16x32xf32>
    %177 = arith.subf %162, %176 : vector<16x32xf32>
    %cst_52 = arith.constant 9.99999996E-13 : f32
    %178 = vector.broadcast %cst_52 : f32 to vector<16x1xf32>
    %179 = arith.addf %175, %178 : vector<16x1xf32>
    %180 = math.rsqrt %179 : vector<16x1xf32>
    %181 = vector.broadcast %180 : vector<16x1xf32> to vector<16x32xf32>
    %182 = arith.mulf %177, %181 : vector<16x32xf32>
    %183 = vector.broadcast %163 : vector<1x32xf32> to vector<16x32xf32>
    %184 = arith.mulf %182, %183 : vector<16x32xf32>
    %185 = vector.broadcast %164 : vector<1x32xf32> to vector<16x32xf32>
    %186 = arith.addf %184, %185 : vector<16x32xf32>
    %187 = arith.truncf %186 : vector<16x32xf32> to vector<16x32xbf16>
    %c64 = arith.constant 64 : index
    %c0_53 = arith.constant 0 : index
    %188 = vector.load %arg5[%c64, %c0_53] : memref<224x128xbf16, #tpu.memory_space<vmem>>, vector<32x64xbf16>
    %cst_54 = arith.constant dense<0.000000e+00> : vector<16x64xf32>
    %189 = tpu.matmul %187, %188, %cst_54 {dimension_numbers = #tpu.dot_dimension_numbers<[1], [0], [0], [1], [0, 0, 1, 1], [], []>} : vector<16x32xbf16>, vector<32x64xbf16>, vector<16x64xf32> -> vector<16x64xf32>
    %c6 = arith.constant 6 : index
    %c0_55 = arith.constant 0 : index
    %190 = vector.load %arg4[%c6, %c0_55] : memref<16x128xf32, #tpu.memory_space<vmem>>, vector<1x64xf32>
    %191 = vector.broadcast %190 : vector<1x64xf32> to vector<16x64xf32>
    %192 = arith.addf %189, %191 : vector<16x64xf32>
    %193 = arith.mulf %192, %192 : vector<16x64xf32>
    %194 = arith.mulf %192, %193 : vector<16x64xf32>
    %cst_56 = arith.constant 4.471500e-02 : f32
    %195 = vector.broadcast %cst_56 : f32 to vector<16x64xf32>
    %196 = arith.mulf %195, %194 : vector<16x64xf32>
    %197 = arith.addf %192, %196 : vector<16x64xf32>
    %cst_57 = arith.constant 0.797884583 : f32
    %198 = vector.broadcast %cst_57 : f32 to vector<16x64xf32>
    %199 = arith.mulf %198, %197 : vector<16x64xf32>
    %200 = math.tanh %199 : vector<16x64xf32>
    %cst_58 = arith.constant 1.000000e+00 : f32
    %201 = vector.broadcast %cst_58 : f32 to vector<16x64xf32>
    %202 = arith.addf %201, %200 : vector<16x64xf32>
    %cst_59 = arith.constant 5.000000e-01 : f32
    %203 = vector.broadcast %cst_59 : f32 to vector<16x64xf32>
    %204 = arith.mulf %203, %202 : vector<16x64xf32>
    %205 = arith.mulf %192, %204 : vector<16x64xf32>
    %206 = arith.truncf %205 : vector<16x64xf32> to vector<16x64xbf16>
    %c96 = arith.constant 96 : index
    %c0_60 = arith.constant 0 : index
    %207 = vector.load %arg5[%c96, %c0_60] : memref<224x128xbf16, #tpu.memory_space<vmem>>, vector<64x32xbf16>
    %cst_61 = arith.constant dense<0.000000e+00> : vector<16x32xf32>
    %208 = tpu.matmul %206, %207, %cst_61 {dimension_numbers = #tpu.dot_dimension_numbers<[1], [0], [0], [1], [0, 0, 1, 1], [], []>} : vector<16x64xbf16>, vector<64x32xbf16>, vector<16x32xf32> -> vector<16x32xf32>
    %c7 = arith.constant 7 : index
    %c0_62 = arith.constant 0 : index
    %209 = vector.load %arg4[%c7, %c0_62] : memref<16x128xf32, #tpu.memory_space<vmem>>, vector<1x32xf32>
    %210 = vector.broadcast %209 : vector<1x32xf32> to vector<16x32xf32>
    %211 = arith.addf %208, %210 : vector<16x32xf32>
    %212 = arith.addf %186, %211 : vector<16x32xf32>
    %c8 = arith.constant 8 : index
    %c0_63 = arith.constant 0 : index
    %213 = vector.load %arg4[%c8, %c0_63] : memref<16x128xf32, #tpu.memory_space<vmem>>, vector<1x32xf32>
    %c9 = arith.constant 9 : index
    %c0_64 = arith.constant 0 : index
    %214 = vector.load %arg4[%c9, %c0_64] : memref<16x128xf32, #tpu.memory_space<vmem>>, vector<1x32xf32>
    %cst_65 = arith.constant dense<0.000000e+00> : vector<16xf32>
    %215 = vector.multi_reduction <add>, %212, %cst_65 [1] : vector<16x32xf32> to vector<16xf32>
    %216 = vector.shape_cast %215 : vector<16xf32> to vector<16x1xf32>
    %cst_66 = arith.constant 3.200000e+01 : f32
    %217 = vector.broadcast %cst_66 : f32 to vector<16x1xf32>
    %218 = arith.divf %216, %217 : vector<16x1xf32>
    %219 = vector.broadcast %218 : vector<16x1xf32> to vector<16x32xf32>
    %220 = arith.subf %212, %219 : vector<16x32xf32>
    %221 = arith.mulf %220, %220 : vector<16x32xf32>
    %cst_67 = arith.constant dense<0.000000e+00> : vector<16xf32>
    %222 = vector.multi_reduction <add>, %221, %cst_67 [1] : vector<16x32xf32> to vector<16xf32>
    %223 = vector.shape_cast %222 : vector<16xf32> to vector<16x1xf32>
    %cst_68 = arith.constant 3.200000e+01 : f32
    %224 = vector.broadcast %cst_68 : f32 to vector<16x1xf32>
    %225 = arith.divf %223, %224 : vector<16x1xf32>
    %226 = vector.broadcast %218 : vector<16x1xf32> to vector<16x32xf32>
    %227 = arith.subf %212, %226 : vector<16x32xf32>
    %cst_69 = arith.constant 9.99999996E-13 : f32
    %228 = vector.broadcast %cst_69 : f32 to vector<16x1xf32>
    %229 = arith.addf %225, %228 : vector<16x1xf32>
    %230 = math.rsqrt %229 : vector<16x1xf32>
    %231 = vector.broadcast %230 : vector<16x1xf32> to vector<16x32xf32>
    %232 = arith.mulf %227, %231 : vector<16x32xf32>
    %233 = vector.broadcast %213 : vector<1x32xf32> to vector<16x32xf32>
    %234 = arith.mulf %232, %233 : vector<16x32xf32>
    %235 = vector.broadcast %214 : vector<1x32xf32> to vector<16x32xf32>
    %236 = arith.addf %234, %235 : vector<16x32xf32>
    %c1_i32_70 = arith.constant 1 : i32
    %237 = arith.truncf %236 : vector<16x32xf32> to vector<16x32xbf16>
    %c0_71 = arith.constant 0 : index
    %c0_72 = arith.constant 0 : index
    %238 = vector.load %arg5[%c0_71, %c0_72] : memref<224x128xbf16, #tpu.memory_space<vmem>>, vector<32x128xbf16>
    %cst_73 = arith.constant dense<0.000000e+00> : vector<16x128xf32>
    %239 = tpu.matmul %237, %238, %cst_73 {dimension_numbers = #tpu.dot_dimension_numbers<[1], [0], [0], [1], [0, 0, 1, 1], [], []>} : vector<16x32xbf16>, vector<32x128xbf16>, vector<16x128xf32> -> vector<16x128xf32>
    %c2_74 = arith.constant 2 : index
    %c0_75 = arith.constant 0 : index
    %240 = vector.load %arg4[%c2_74, %c0_75] : memref<16x128xf32, #tpu.memory_space<vmem>>, vector<1x128xf32>
    %241 = vector.broadcast %240 : vector<1x128xf32> to vector<16x128xf32>
    %242 = arith.addf %239, %241 : vector<16x128xf32>
    %243 = vector.extract_strided_slice %242 {offsets = [0, 0], sizes = [16, 8], strides = [1, 1]} : vector<16x128xf32> to vector<16x8xf32>
    %244 = arith.truncf %243 : vector<16x8xf32> to vector<16x8xbf16>
    %245 = vector.extract_strided_slice %242 {offsets = [0, 32], sizes = [16, 8], strides = [1, 1]} : vector<16x128xf32> to vector<16x8xf32>
    %246 = arith.truncf %245 : vector<16x8xf32> to vector<16x8xbf16>
    %247 = vector.extract_strided_slice %242 {offsets = [0, 64], sizes = [16, 8], strides = [1, 1]} : vector<16x128xf32> to vector<16x8xf32>
    %248 = arith.truncf %247 : vector<16x8xf32> to vector<16x8xbf16>
    %cst_76 = arith.constant dense<0.000000e+00> : vector<16x16xf32>
    %249 = tpu.matmul %244, %246, %cst_76 {dimension_numbers = #tpu.dot_dimension_numbers<[1], [1], [0], [0], [0, 0, 1, 0], [], []>} : vector<16x8xbf16>, vector<16x8xbf16>, vector<16x16xf32> -> vector<16x16xf32>
    %cst_77 = arith.constant 0.353553385 : f32
    %250 = vector.broadcast %cst_77 : f32 to vector<16x16xf32>
    %251 = arith.mulf %249, %250 : vector<16x16xf32>
    %252 = arith.addf %251, %2 : vector<16x16xf32>
    %cst_78 = arith.constant dense<0xFF800000> : vector<16xf32>
    %253 = vector.multi_reduction <maximumf>, %252, %cst_78 [1] : vector<16x16xf32> to vector<16xf32>
    %254 = vector.shape_cast %253 : vector<16xf32> to vector<16x1xf32>
    %255 = vector.broadcast %254 : vector<16x1xf32> to vector<16x16xf32>
    %256 = arith.subf %252, %255 : vector<16x16xf32>
    %257 = math.exp %256 : vector<16x16xf32>
    %cst_79 = arith.constant dense<0.000000e+00> : vector<16xf32>
    %258 = vector.multi_reduction <add>, %257, %cst_79 [1] : vector<16x16xf32> to vector<16xf32>
    %259 = vector.shape_cast %258 : vector<16xf32> to vector<16x1xf32>
    %260 = tpu.reciprocal %259 {approx = true} : vector<16x1xf32> -> vector<16x1xf32>
    %261 = vector.broadcast %260 : vector<16x1xf32> to vector<16x16xf32>
    %262 = arith.mulf %257, %261 : vector<16x16xf32>
    %263 = arith.truncf %262 : vector<16x16xf32> to vector<16x16xbf16>
    %cst_80 = arith.constant dense<0.000000e+00> : vector<16x8xf32>
    %264 = tpu.matmul %263, %248, %cst_80 {dimension_numbers = #tpu.dot_dimension_numbers<[1], [0], [0], [1], [0, 0, 1, 1], [], []>} : vector<16x16xbf16>, vector<16x8xbf16>, vector<16x8xf32> -> vector<16x8xf32>
    %265 = vector.extract_strided_slice %242 {offsets = [0, 8], sizes = [16, 8], strides = [1, 1]} : vector<16x128xf32> to vector<16x8xf32>
    %266 = arith.truncf %265 : vector<16x8xf32> to vector<16x8xbf16>
    %267 = vector.extract_strided_slice %242 {offsets = [0, 40], sizes = [16, 8], strides = [1, 1]} : vector<16x128xf32> to vector<16x8xf32>
    %268 = arith.truncf %267 : vector<16x8xf32> to vector<16x8xbf16>
    %269 = vector.extract_strided_slice %242 {offsets = [0, 72], sizes = [16, 8], strides = [1, 1]} : vector<16x128xf32> to vector<16x8xf32>
    %270 = arith.truncf %269 : vector<16x8xf32> to vector<16x8xbf16>
    %cst_81 = arith.constant dense<0.000000e+00> : vector<16x16xf32>
    %271 = tpu.matmul %266, %268, %cst_81 {dimension_numbers = #tpu.dot_dimension_numbers<[1], [1], [0], [0], [0, 0, 1, 0], [], []>} : vector<16x8xbf16>, vector<16x8xbf16>, vector<16x16xf32> -> vector<16x16xf32>
    %cst_82 = arith.constant 0.353553385 : f32
    %272 = vector.broadcast %cst_82 : f32 to vector<16x16xf32>
    %273 = arith.mulf %271, %272 : vector<16x16xf32>
    %274 = arith.addf %273, %2 : vector<16x16xf32>
    %cst_83 = arith.constant dense<0xFF800000> : vector<16xf32>
    %275 = vector.multi_reduction <maximumf>, %274, %cst_83 [1] : vector<16x16xf32> to vector<16xf32>
    %276 = vector.shape_cast %275 : vector<16xf32> to vector<16x1xf32>
    %277 = vector.broadcast %276 : vector<16x1xf32> to vector<16x16xf32>
    %278 = arith.subf %274, %277 : vector<16x16xf32>
    %279 = math.exp %278 : vector<16x16xf32>
    %cst_84 = arith.constant dense<0.000000e+00> : vector<16xf32>
    %280 = vector.multi_reduction <add>, %279, %cst_84 [1] : vector<16x16xf32> to vector<16xf32>
    %281 = vector.shape_cast %280 : vector<16xf32> to vector<16x1xf32>
    %282 = tpu.reciprocal %281 {approx = true} : vector<16x1xf32> -> vector<16x1xf32>
    %283 = vector.broadcast %282 : vector<16x1xf32> to vector<16x16xf32>
    %284 = arith.mulf %279, %283 : vector<16x16xf32>
    %285 = arith.truncf %284 : vector<16x16xf32> to vector<16x16xbf16>
    %cst_85 = arith.constant dense<0.000000e+00> : vector<16x8xf32>
    %286 = tpu.matmul %285, %270, %cst_85 {dimension_numbers = #tpu.dot_dimension_numbers<[1], [0], [0], [1], [0, 0, 1, 1], [], []>} : vector<16x16xbf16>, vector<16x8xbf16>, vector<16x8xf32> -> vector<16x8xf32>
    %287 = vector.extract_strided_slice %242 {offsets = [0, 16], sizes = [16, 8], strides = [1, 1]} : vector<16x128xf32> to vector<16x8xf32>
    %288 = arith.truncf %287 : vector<16x8xf32> to vector<16x8xbf16>
    %289 = vector.extract_strided_slice %242 {offsets = [0, 48], sizes = [16, 8], strides = [1, 1]} : vector<16x128xf32> to vector<16x8xf32>
    %290 = arith.truncf %289 : vector<16x8xf32> to vector<16x8xbf16>
    %291 = vector.extract_strided_slice %242 {offsets = [0, 80], sizes = [16, 8], strides = [1, 1]} : vector<16x128xf32> to vector<16x8xf32>
    %292 = arith.truncf %291 : vector<16x8xf32> to vector<16x8xbf16>
    %cst_86 = arith.constant dense<0.000000e+00> : vector<16x16xf32>
    %293 = tpu.matmul %288, %290, %cst_86 {dimension_numbers = #tpu.dot_dimension_numbers<[1], [1], [0], [0], [0, 0, 1, 0], [], []>} : vector<16x8xbf16>, vector<16x8xbf16>, vector<16x16xf32> -> vector<16x16xf32>
    %cst_87 = arith.constant 0.353553385 : f32
    %294 = vector.broadcast %cst_87 : f32 to vector<16x16xf32>
    %295 = arith.mulf %293, %294 : vector<16x16xf32>
    %296 = arith.addf %295, %2 : vector<16x16xf32>
    %cst_88 = arith.constant dense<0xFF800000> : vector<16xf32>
    %297 = vector.multi_reduction <maximumf>, %296, %cst_88 [1] : vector<16x16xf32> to vector<16xf32>
    %298 = vector.shape_cast %297 : vector<16xf32> to vector<16x1xf32>
    %299 = vector.broadcast %298 : vector<16x1xf32> to vector<16x16xf32>
    %300 = arith.subf %296, %299 : vector<16x16xf32>
    %301 = math.exp %300 : vector<16x16xf32>
    %cst_89 = arith.constant dense<0.000000e+00> : vector<16xf32>
    %302 = vector.multi_reduction <add>, %301, %cst_89 [1] : vector<16x16xf32> to vector<16xf32>
    %303 = vector.shape_cast %302 : vector<16xf32> to vector<16x1xf32>
    %304 = tpu.reciprocal %303 {approx = true} : vector<16x1xf32> -> vector<16x1xf32>
    %305 = vector.broadcast %304 : vector<16x1xf32> to vector<16x16xf32>
    %306 = arith.mulf %301, %305 : vector<16x16xf32>
    %307 = arith.truncf %306 : vector<16x16xf32> to vector<16x16xbf16>
    %cst_90 = arith.constant dense<0.000000e+00> : vector<16x8xf32>
    %308 = tpu.matmul %307, %292, %cst_90 {dimension_numbers = #tpu.dot_dimension_numbers<[1], [0], [0], [1], [0, 0, 1, 1], [], []>} : vector<16x16xbf16>, vector<16x8xbf16>, vector<16x8xf32> -> vector<16x8xf32>
    %309 = vector.extract_strided_slice %242 {offsets = [0, 24], sizes = [16, 8], strides = [1, 1]} : vector<16x128xf32> to vector<16x8xf32>
    %310 = arith.truncf %309 : vector<16x8xf32> to vector<16x8xbf16>
    %311 = vector.extract_strided_slice %242 {offsets = [0, 56], sizes = [16, 8], strides = [1, 1]} : vector<16x128xf32> to vector<16x8xf32>
    %312 = arith.truncf %311 : vector<16x8xf32> to vector<16x8xbf16>
    %313 = vector.extract_strided_slice %242 {offsets = [0, 88], sizes = [16, 8], strides = [1, 1]} : vector<16x128xf32> to vector<16x8xf32>
    %314 = arith.truncf %313 : vector<16x8xf32> to vector<16x8xbf16>
    %cst_91 = arith.constant dense<0.000000e+00> : vector<16x16xf32>
    %315 = tpu.matmul %310, %312, %cst_91 {dimension_numbers = #tpu.dot_dimension_numbers<[1], [1], [0], [0], [0, 0, 1, 0], [], []>} : vector<16x8xbf16>, vector<16x8xbf16>, vector<16x16xf32> -> vector<16x16xf32>
    %cst_92 = arith.constant 0.353553385 : f32
    %316 = vector.broadcast %cst_92 : f32 to vector<16x16xf32>
    %317 = arith.mulf %315, %316 : vector<16x16xf32>
    %318 = arith.addf %317, %2 : vector<16x16xf32>
    %cst_93 = arith.constant dense<0xFF800000> : vector<16xf32>
    %319 = vector.multi_reduction <maximumf>, %318, %cst_93 [1] : vector<16x16xf32> to vector<16xf32>
    %320 = vector.shape_cast %319 : vector<16xf32> to vector<16x1xf32>
    %321 = vector.broadcast %320 : vector<16x1xf32> to vector<16x16xf32>
    %322 = arith.subf %318, %321 : vector<16x16xf32>
    %323 = math.exp %322 : vector<16x16xf32>
    %cst_94 = arith.constant dense<0.000000e+00> : vector<16xf32>
    %324 = vector.multi_reduction <add>, %323, %cst_94 [1] : vector<16x16xf32> to vector<16xf32>
    %325 = vector.shape_cast %324 : vector<16xf32> to vector<16x1xf32>
    %326 = tpu.reciprocal %325 {approx = true} : vector<16x1xf32> -> vector<16x1xf32>
    %327 = vector.broadcast %326 : vector<16x1xf32> to vector<16x16xf32>
    %328 = arith.mulf %323, %327 : vector<16x16xf32>
    %329 = arith.truncf %328 : vector<16x16xf32> to vector<16x16xbf16>
    %cst_95 = arith.constant dense<0.000000e+00> : vector<16x8xf32>
    %330 = tpu.matmul %329, %314, %cst_95 {dimension_numbers = #tpu.dot_dimension_numbers<[1], [0], [0], [1], [0, 0, 1, 1], [], []>} : vector<16x16xbf16>, vector<16x8xbf16>, vector<16x8xf32> -> vector<16x8xf32>
    %331 = tpu.concatenate %264, %286, %308, %330 in 1 : vector<16x8xf32>, vector<16x8xf32>, vector<16x8xf32>, vector<16x8xf32> -> vector<16x32xf32>
    %332 = arith.truncf %331 : vector<16x32xf32> to vector<16x32xbf16>
    %c32_96 = arith.constant 32 : index
    %c0_97 = arith.constant 0 : index
    %333 = vector.load %arg5[%c32_96, %c0_97] : memref<224x128xbf16, #tpu.memory_space<vmem>>, vector<32x32xbf16>
    %cst_98 = arith.constant dense<0.000000e+00> : vector<16x32xf32>
    %334 = tpu.matmul %332, %333, %cst_98 {dimension_numbers = #tpu.dot_dimension_numbers<[1], [0], [0], [1], [0, 0, 1, 1], [], []>} : vector<16x32xbf16>, vector<32x32xbf16>, vector<16x32xf32> -> vector<16x32xf32>
    %c3_99 = arith.constant 3 : index
    %c0_100 = arith.constant 0 : index
    %335 = vector.load %arg4[%c3_99, %c0_100] : memref<16x128xf32, #tpu.memory_space<vmem>>, vector<1x32xf32>
    %336 = vector.broadcast %335 : vector<1x32xf32> to vector<16x32xf32>
    %337 = arith.addf %334, %336 : vector<16x32xf32>
    %338 = arith.addf %236, %337 : vector<16x32xf32>
    %c4_101 = arith.constant 4 : index
    %c0_102 = arith.constant 0 : index
    %339 = vector.load %arg4[%c4_101, %c0_102] : memref<16x128xf32, #tpu.memory_space<vmem>>, vector<1x32xf32>
    %c5_103 = arith.constant 5 : index
    %c0_104 = arith.constant 0 : index
    %340 = vector.load %arg4[%c5_103, %c0_104] : memref<16x128xf32, #tpu.memory_space<vmem>>, vector<1x32xf32>
    %cst_105 = arith.constant dense<0.000000e+00> : vector<16xf32>
    %341 = vector.multi_reduction <add>, %338, %cst_105 [1] : vector<16x32xf32> to vector<16xf32>
    %342 = vector.shape_cast %341 : vector<16xf32> to vector<16x1xf32>
    %cst_106 = arith.constant 3.200000e+01 : f32
    %343 = vector.broadcast %cst_106 : f32 to vector<16x1xf32>
    %344 = arith.divf %342, %343 : vector<16x1xf32>
    %345 = vector.broadcast %344 : vector<16x1xf32> to vector<16x32xf32>
    %346 = arith.subf %338, %345 : vector<16x32xf32>
    %347 = arith.mulf %346, %346 : vector<16x32xf32>
    %cst_107 = arith.constant dense<0.000000e+00> : vector<16xf32>
    %348 = vector.multi_reduction <add>, %347, %cst_107 [1] : vector<16x32xf32> to vector<16xf32>
    %349 = vector.shape_cast %348 : vector<16xf32> to vector<16x1xf32>
    %cst_108 = arith.constant 3.200000e+01 : f32
    %350 = vector.broadcast %cst_108 : f32 to vector<16x1xf32>
    %351 = arith.divf %349, %350 : vector<16x1xf32>
    %352 = vector.broadcast %344 : vector<16x1xf32> to vector<16x32xf32>
    %353 = arith.subf %338, %352 : vector<16x32xf32>
    %cst_109 = arith.constant 9.99999996E-13 : f32
    %354 = vector.broadcast %cst_109 : f32 to vector<16x1xf32>
    %355 = arith.addf %351, %354 : vector<16x1xf32>
    %356 = math.rsqrt %355 : vector<16x1xf32>
    %357 = vector.broadcast %356 : vector<16x1xf32> to vector<16x32xf32>
    %358 = arith.mulf %353, %357 : vector<16x32xf32>
    %359 = vector.broadcast %339 : vector<1x32xf32> to vector<16x32xf32>
    %360 = arith.mulf %358, %359 : vector<16x32xf32>
    %361 = vector.broadcast %340 : vector<1x32xf32> to vector<16x32xf32>
    %362 = arith.addf %360, %361 : vector<16x32xf32>
    %363 = arith.truncf %362 : vector<16x32xf32> to vector<16x32xbf16>
    %c64_110 = arith.constant 64 : index
    %c0_111 = arith.constant 0 : index
    %364 = vector.load %arg5[%c64_110, %c0_111] : memref<224x128xbf16, #tpu.memory_space<vmem>>, vector<32x64xbf16>
    %cst_112 = arith.constant dense<0.000000e+00> : vector<16x64xf32>
    %365 = tpu.matmul %363, %364, %cst_112 {dimension_numbers = #tpu.dot_dimension_numbers<[1], [0], [0], [1], [0, 0, 1, 1], [], []>} : vector<16x32xbf16>, vector<32x64xbf16>, vector<16x64xf32> -> vector<16x64xf32>
    %c6_113 = arith.constant 6 : index
    %c0_114 = arith.constant 0 : index
    %366 = vector.load %arg4[%c6_113, %c0_114] : memref<16x128xf32, #tpu.memory_space<vmem>>, vector<1x64xf32>
    %367 = vector.broadcast %366 : vector<1x64xf32> to vector<16x64xf32>
    %368 = arith.addf %365, %367 : vector<16x64xf32>
    %369 = arith.mulf %368, %368 : vector<16x64xf32>
    %370 = arith.mulf %368, %369 : vector<16x64xf32>
    %cst_115 = arith.constant 4.471500e-02 : f32
    %371 = vector.broadcast %cst_115 : f32 to vector<16x64xf32>
    %372 = arith.mulf %371, %370 : vector<16x64xf32>
    %373 = arith.addf %368, %372 : vector<16x64xf32>
    %cst_116 = arith.constant 0.797884583 : f32
    %374 = vector.broadcast %cst_116 : f32 to vector<16x64xf32>
    %375 = arith.mulf %374, %373 : vector<16x64xf32>
    %376 = math.tanh %375 : vector<16x64xf32>
    %cst_117 = arith.constant 1.000000e+00 : f32
    %377 = vector.broadcast %cst_117 : f32 to vector<16x64xf32>
    %378 = arith.addf %377, %376 : vector<16x64xf32>
    %cst_118 = arith.constant 5.000000e-01 : f32
    %379 = vector.broadcast %cst_118 : f32 to vector<16x64xf32>
    %380 = arith.mulf %379, %378 : vector<16x64xf32>
    %381 = arith.mulf %368, %380 : vector<16x64xf32>
    %382 = arith.truncf %381 : vector<16x64xf32> to vector<16x64xbf16>
    %c96_119 = arith.constant 96 : index
    %c0_120 = arith.constant 0 : index
    %383 = vector.load %arg5[%c96_119, %c0_120] : memref<224x128xbf16, #tpu.memory_space<vmem>>, vector<64x32xbf16>
    %cst_121 = arith.constant dense<0.000000e+00> : vector<16x32xf32>
    %384 = tpu.matmul %382, %383, %cst_121 {dimension_numbers = #tpu.dot_dimension_numbers<[1], [0], [0], [1], [0, 0, 1, 1], [], []>} : vector<16x64xbf16>, vector<64x32xbf16>, vector<16x32xf32> -> vector<16x32xf32>
    %c7_122 = arith.constant 7 : index
    %c0_123 = arith.constant 0 : index
    %385 = vector.load %arg4[%c7_122, %c0_123] : memref<16x128xf32, #tpu.memory_space<vmem>>, vector<1x32xf32>
    %386 = vector.broadcast %385 : vector<1x32xf32> to vector<16x32xf32>
    %387 = arith.addf %384, %386 : vector<16x32xf32>
    %388 = arith.addf %362, %387 : vector<16x32xf32>
    %c8_124 = arith.constant 8 : index
    %c0_125 = arith.constant 0 : index
    %389 = vector.load %arg4[%c8_124, %c0_125] : memref<16x128xf32, #tpu.memory_space<vmem>>, vector<1x32xf32>
    %c9_126 = arith.constant 9 : index
    %c0_127 = arith.constant 0 : index
    %390 = vector.load %arg4[%c9_126, %c0_127] : memref<16x128xf32, #tpu.memory_space<vmem>>, vector<1x32xf32>
    %cst_128 = arith.constant dense<0.000000e+00> : vector<16xf32>
    %391 = vector.multi_reduction <add>, %388, %cst_128 [1] : vector<16x32xf32> to vector<16xf32>
    %392 = vector.shape_cast %391 : vector<16xf32> to vector<16x1xf32>
    %cst_129 = arith.constant 3.200000e+01 : f32
    %393 = vector.broadcast %cst_129 : f32 to vector<16x1xf32>
    %394 = arith.divf %392, %393 : vector<16x1xf32>
    %395 = vector.broadcast %394 : vector<16x1xf32> to vector<16x32xf32>
    %396 = arith.subf %388, %395 : vector<16x32xf32>
    %397 = arith.mulf %396, %396 : vector<16x32xf32>
    %cst_130 = arith.constant dense<0.000000e+00> : vector<16xf32>
    %398 = vector.multi_reduction <add>, %397, %cst_130 [1] : vector<16x32xf32> to vector<16xf32>
    %399 = vector.shape_cast %398 : vector<16xf32> to vector<16x1xf32>
    %cst_131 = arith.constant 3.200000e+01 : f32
    %400 = vector.broadcast %cst_131 : f32 to vector<16x1xf32>
    %401 = arith.divf %399, %400 : vector<16x1xf32>
    %402 = vector.broadcast %394 : vector<16x1xf32> to vector<16x32xf32>
    %403 = arith.subf %388, %402 : vector<16x32xf32>
    %cst_132 = arith.constant 9.99999996E-13 : f32
    %404 = vector.broadcast %cst_132 : f32 to vector<16x1xf32>
    %405 = arith.addf %401, %404 : vector<16x1xf32>
    %406 = math.rsqrt %405 : vector<16x1xf32>
    %407 = vector.broadcast %406 : vector<16x1xf32> to vector<16x32xf32>
    %408 = arith.mulf %403, %407 : vector<16x32xf32>
    %409 = vector.broadcast %389 : vector<1x32xf32> to vector<16x32xf32>
    %410 = arith.mulf %408, %409 : vector<16x32xf32>
    %411 = vector.broadcast %390 : vector<1x32xf32> to vector<16x32xf32>
    %412 = arith.addf %410, %411 : vector<16x32xf32>
    %413 = vector.extract_strided_slice %412 {offsets = [0, 0], sizes = [1, 32], strides = [1, 1]} : vector<16x32xf32> to vector<1x32xf32>
    %414 = vector.extract_strided_slice %412 {offsets = [8, 0], sizes = [1, 32], strides = [1, 1]} : vector<16x32xf32> to vector<1x32xf32>
    %415 = tpu.concatenate %413, %414 in 0 : vector<1x32xf32>, vector<1x32xf32> -> vector<2x32xf32>
    %416 = arith.truncf %415 : vector<2x32xf32> to vector<2x32xbf16>
    %c160 = arith.constant 160 : index
    %c0_133 = arith.constant 0 : index
    %417 = vector.load %arg5[%c160, %c0_133] : memref<224x128xbf16, #tpu.memory_space<vmem>>, vector<32x32xbf16>
    %cst_134 = arith.constant dense<0.000000e+00> : vector<2x32xf32>
    %418 = tpu.matmul %416, %417, %cst_134 {dimension_numbers = #tpu.dot_dimension_numbers<[1], [0], [0], [1], [0, 0, 1, 1], [], []>} : vector<2x32xbf16>, vector<32x32xbf16>, vector<2x32xf32> -> vector<2x32xf32>
    %c10 = arith.constant 10 : index
    %c0_135 = arith.constant 0 : index
    %419 = vector.load %arg4[%c10, %c0_135] : memref<16x128xf32, #tpu.memory_space<vmem>>, vector<1x32xf32>
    %420 = vector.broadcast %419 : vector<1x32xf32> to vector<2x32xf32>
    %421 = arith.addf %418, %420 : vector<2x32xf32>
    %422 = math.tanh %421 : vector<2x32xf32>
    %423 = arith.truncf %422 : vector<2x32xf32> to vector<2x32xbf16>
    %c192 = arith.constant 192 : index
    %c0_136 = arith.constant 0 : index
    %424 = vector.load %arg5[%c192, %c0_136] : memref<224x128xbf16, #tpu.memory_space<vmem>>, vector<32x128xbf16>
    %cst_137 = arith.constant dense<0.000000e+00> : vector<2x128xf32>
    %425 = tpu.matmul %423, %424, %cst_137 {dimension_numbers = #tpu.dot_dimension_numbers<[1], [0], [0], [1], [0, 0, 1, 1], [], []>} : vector<2x32xbf16>, vector<32x128xbf16>, vector<2x128xf32> -> vector<2x128xf32>
    %c11 = arith.constant 11 : index
    %c0_138 = arith.constant 0 : index
    %426 = vector.load %arg4[%c11, %c0_138] : memref<16x128xf32, #tpu.memory_space<vmem>>, vector<1x128xf32>
    %427 = vector.broadcast %426 : vector<1x128xf32> to vector<2x128xf32>
    %428 = arith.addf %425, %427 : vector<2x128xf32>
    %c0_139 = arith.constant 0 : index
    %c0_140 = arith.constant 0 : index
    %429 = vector.load %arg6[%c0_139, %c0_140] : memref<2x128xf32, #tpu.memory_space<vmem>>, vector<2x128xf32>
    tpu.vector_store %arg6[%c0_139, %c0_140], %428 {strides = array<i32>} : memref<2x128xf32, #tpu.memory_space<vmem>>, vector<2x128xf32>,
    return
  }
}

</mosaic_0001>

<bundles_post_ra>
// kernel: bert_forward.1
= control target key start
LH: loop header
LB: loop body
LE: loop exit
PB: predicated region body
PF: predicated region fallthrough
CT: control target
= control target key end

     0   :  { %v28_v0 = vlaneseq  ;;  %v2609_v3 = vmov 0.0   ;;  %vm131_vm10 = vcmask 654336   ;;  %vm215_vm11 = vcmask 261120   ;;  %s2611_s28 = smov 80   ;;  %s2613_s29 = smov 88   ;;  %s3199_s0 = inlined_call_operand.vmem [shape: s32[1,16], index: 0, kind: input, shape index: {}]   ;;  %s3200_s3 = inlined_call_operand.vmem [shape: f32[80,32], index: 3, kind: input, shape index: {}]   ;;  %s3201_s1 = inlined_call_operand.vmem [shape: s32[1,16], index: 1, kind: input, shape index: {}]   ;;  %s3202_s5 = inlined_call_operand.vmem [shape: bf16[224,128], index: 5, kind: input, shape index: {}]   ;;  %s3203_s4 = inlined_call_operand.vmem [shape: f32[16,128], index: 4, kind: input, shape index: {}]   ;;  %s3204_s2 = inlined_call_operand.vmem [shape: f32[16,16], index: 2, kind: input, shape index: {}]   ;;  %s3205_s6 = inlined_call_operand.vmem [shape: f32[2,128], index: 6, kind: output, shape index: {}]  }
   0x1   :  { %v2663_v1 = vld [vmem:[%s3199_s0] ss:$0 sm:$0xff]  ;;  %v98_v2 = vld [vmem:[%s3200_s3 + $0x48] sm:$0xff]  ;;  %2271 = vmatprep.subr.bf16.mxu1 %v2609_v3  ;;  %v96_v6 = vld [vmem:[%s3200_s3 + $0x38] sm:$0xff]  ;;  %vm2610_vm12 = vmmov 0   ;;  %s2612_s0 = smov 96  }
   0x2   :  { %v2670_v4 = vshrl.u32 %v28_v0, 7  ;;  %2248 = vmatprep.subr.mxu0 %v98_v2  ;;  %v97_v5 = vld [vmem:[%s3200_s3 + $0x40] sm:$0xff]  ;;  %v95_v10 = vld [vmem:[%s3200_s3 + $0x30] sm:$0xff]  ;;  %v94_v12 = vld [vmem:[%s3200_s3 + $0x28] sm:$0xff]  ;;  %v73_v28 = vand.u32 127, %v28_v0  ;;  %2275 = vmatprep.mubr.msk.bf16.mxu1 %vm2610_vm12, %v2609_v3  ;;  %s2614_s30 = smov 120  }
   0x3   :  { %2249 = vmatpush3.msra.mxu0 %v98_v2  ;;  %v93_v14 = vld [vmem:[%s3200_s3 + $0x20] sm:$0xff]  ;;  %v92_v16 = vld [vmem:[%s3200_s3 + $0x18] sm:$0xff]  ;;  %v91_v18 = vld [vmem:[%s3200_s3 + $0x10] sm:$0xff]  ;;  %s2615_s7 = smov 112   ;;  %s2616_s8 = smov 72   ;;  %vm325_vm13 = vcmask 64512  }
   0x4   :  { %vm41_vm0 = vcmp.eq.s32.totalorder %v2663_v1, %v2670_v4  ;;  %v30_v7 = vadd.s32 8, %v2670_v4  ;;  %v31_v8 = vadd.s32 16, %v2670_v4  ;;  %2250 = vmatprep.subr.mxu0 %v97_v5  ;;  %v32_v13 = vadd.s32 24, %v2670_v4  ;;  %v90_v20 = vld [vmem:[%s3200_s3 + $0x8] sm:$0xff]  ;;  %v89_v22 = vld [vmem:[%s3200_s3] sm:$0xff]  ;;  %s2617_s9 = smov 104  }
   0x5   :  { %v2105_v9 = vsel %vm41_vm0, 1.0, %v2609_v3  ;;  %2251 = vmatpush3.msra.mxu0 %v97_v5  ;;  %v33_v17 = vadd.s32 32, %v2670_v4  ;;  %v34_v21 = vadd.s32 40, %v2670_v4  ;;  %v35_v24 = vadd.s32 48, %v2670_v4  ;;  %v2113_v29 = vld [vmem:[%s3201_s1] ss:$0 sm:$0xff] }
   0x6   :  { %99 = vxpose.xlu0.b32.start [1/10] (short) (narrow) %v2105_v9, 16  ;;  %vm42_vm1 = vcmp.eq.s32.totalorder %v2663_v1, %v30_v7  ;;  %2252 = vmatprep.subr.mxu0 %v96_v6  ;;  %vm43_vm2 = vcmp.eq.s32.totalorder %v2663_v1, %v31_v8  ;;  %vm44_vm3 = vcmp.eq.s32.totalorder %v2663_v1, %v32_v13  ;;  %v36_v26 = vadd.s32 56, %v2670_v4  ;;  %v2739_v50 = vld [vmem:[%s3202_s5 + $0x8] sm:$0xff]   ;;  %v2749_v51 = vld [vmem:[%s3202_s5] sm:$0xff]   ;;  %s2619_s14 = smov 64   ;;  %s2620_s15 = smov 48  }
   0x7   :  { %v2106_v11 = vsel %vm42_vm1, 1.0, %v2609_v3  ;;  %2253 = vmatpush3.msra.mxu0 %v96_v6  ;;  %v2107_v15 = vsel %vm43_vm2, 1.0, %v2609_v3  ;;  %v2108_v19 = vsel %vm44_vm3, 1.0, %v2609_v3  ;;  %vm45_vm4 = vcmp.eq.s32.totalorder %v2663_v1, %v33_v17  ;;  %2272 = vmatpush3.bf16.msra.mxu1 %v2739_v50  ;;  %v2118_v60 = vld [vmem:[%s3203_s4] ss:$0 sm:$0xff]  ;;  %s2621_s16 = smov 40  }
   0x8   :  { %2254 = vmatprep.subr.mxu0 %v95_v10  ;;  %v2109_v23 = vsel %vm45_vm4, 1.0, %v2609_v3  ;;  %vm46_vm5 = vcmp.eq.s32.totalorder %v2663_v1, %v34_v21  ;;  %vm47_vm6 = vcmp.eq.s32.totalorder %v2663_v1, %v35_v24  ;;  %vm48_vm7 = vcmp.eq.s32.totalorder %v2663_v1, %v36_v26  ;;  %2273 = vmatprep.subr.bf16.mxu1 %v2609_v3  ;;  %v2119_v0 = vld [vmem:[%s3203_s4 + $0x1] ss:$0 sm:$0xff]  ;;  %v2772_v7 = vld [vmem:[%s3203_s4 + $0x2] ss:$0 sm:$0xff]  ;;  %s2622_s18 = smov 8  }
   0x9   :  { %2255 = vmatpush3.msra.mxu0 %v95_v10  ;;  %v2110_v25 = vsel %vm46_vm5, 1.0, %v2609_v3  ;;  %v2111_v27 = vsel %vm47_vm6, 1.0, %v2609_v3  ;;  %v2112_v30 = vsel %vm48_vm7, 1.0, %v2609_v3  ;;  %vm69_vm8 = vcmp.eq.s32.totalorder %v2113_v29, %v2670_v4  ;;  %v2816_v26 = vld [vmem:[%s3204_s2] sm:$0xff]  ;;  %s2623_s20 = smov 16   ;;  %s2624_s21 = smov 24  }
   0xa   :  { %100 = vxpose.xlu0.b32.cont [2/10] (short) (narrow) %v2106_v11, 16  ;;  %2256 = vmatprep.subr.mxu0 %v94_v12  ;;  %v78_v31 = vand.u32 7, %v73_v28  ;;  %v2114_v32 = vsel %vm69_vm8, 1.0, %v2609_v3  ;;  %vm377_vm14 = vcmask 130048   ;;  %vm851_vm15 = vcmask 195584  }
   0xb   :  { %2257 = vmatpush3.msra.mxu0 %v94_v12  ;;  %2274 = vmatpush3.bf16.msra.mxu1 %v2749_v51  ;;  %vm1084_vm0 = vcmask 523264   ;;  %vm1966_vm1 = vcmask 1040384  }
   0xc   :  { %2258 = vmatprep.subr.mxu0 %v93_v14  ;;  %vm86_vm9 = vcmp.eq.s32.totalorder %v78_v31, %v2670_v4  ;;  %2279 = vmatprep.subr.bf16.mxu1 %v2609_v3  ;;  %v2822_v31 = vld [vmem:[%s3204_s2 + $0x8] sm:$0xff]  ;;  %s2618_s2 = smov 56  }
   0xd   :  { %2259 = vmatpush3.msra.mxu0 %v93_v14  ;;  %v2115_v33 = vsel %vm86_vm9, 1.0, %v2609_v3 }
   0xe   :  { %101 = vxpose.xlu0.b32.cont [3/10] (short) (narrow) %v2107_v15, 16  ;;  %2260 = vmatprep.subr.mxu0 %v92_v16 }
   0xf   :  { %2261 = vmatpush3.msra.mxu0 %v92_v16 }
  0x10   :  { %2262 = vmatprep.subr.mxu0 %v91_v18 }
  0x11   :  { %2263 = vmatpush3.msra.mxu0 %v91_v18 }
  0x12   :  { %102 = vxpose.xlu0.b32.cont [4/10] (short) (narrow) %v2108_v19, 16  ;;  %2264 = vmatprep.subr.mxu0 %v90_v20 }
  0x13   :  { %2265 = vmatpush3.msra.mxu0 %v90_v20 }
  0x14   :  { %2266 = vmatprep.subr.mxu0 %v89_v22 }
  0x15   :  { %2267 = vmatpush3.msra.mxu0 %v89_v22 }
  0x16   :  { %103 = vxpose.xlu0.b32.cont [5/10] (short) (narrow) %v2109_v23, 16  ;;  %2285 = vmatprep.subr.bf16.mxu0 %v2609_v3 }
  0x1a   :  { %104 = vxpose.xlu0.b32.cont [6/10] (short) (narrow) %v2110_v25, 16 }
  0x1e   :  { %105 = vxpose.xlu0.b32.cont [7/10] (short) (narrow) %v2111_v27, 16 }
  0x22   :  { %106 = vxpose.xlu0.b32.cont [8/10] (short) (narrow) %v2112_v30, 16 }
  0x26   :  { %107 = vxpose.xlu0.b32.cont [9/10] (short) (narrow) %v2114_v32, 16 }
  0x2a   :  { %108 = vxpose.xlu0.b32.end [10/10] (short) (narrow) %v2115_v33, 16 }
  0x82   :  { %v115_v34 = vpop.trf.xlu0 }
  0x83   :  { %2268 = vmatprep.mubr.msk.f32.mxu0 %vm131_vm10, %v115_v34 }
  0x86   :  { %v116_v35 = vpop.trf.xlu0 }
  0x87   :  { %2269 = vmatmul.mubr.msk.f32.vlgmr.msra.gmra.mxu0 %vm131_vm10, %v116_v35 }
  0x88   :  { %2287 = vmatprep.mubr.msk.bf16.mxu0 %vm2610_vm12, %v2609_v3 }
 0x147   :  { %v2270_v36 = vpop.f32.mrf.mxu0 }
 0x148   :  { %v219_v39 = vsel %vm215_vm11, %v2270_v36, 0.0 }
 0x149   :  { %v204_v37 = vpop.f32.mrf.mxu0 }
 0x14a   :  { %v216_v38 = vsel %vm215_vm11, %v204_v37, 0.0 }
 0x14b   :  { %217 = vadd.xlane.f32.xlu1 %v216_v38 }
 0x14f   :  { %220 = vadd.xlane.f32.xlu1 %v219_v39 }
 0x1d4   :  { %v218_v40 = vpop.xlane.xlu1 %217 }
 0x1d5   :  { %v223_v41 = vmul.f32 0.03125, %v218_v40 }
 0x1d7   :  { %v225_v42 = vsub.f32 %v204_v37, %v223_v41 }
 0x1d8   :  { %v221_v43 = vpop.xlane.xlu1 %220 }
 0x1d9   :  { %v224_v44 = vmul.f32 0.03125, %v221_v43  ;;  %v227_v45 = vmul.f32 %v225_v42, %v225_v42 }
 0x1db   :  { %v226_v46 = vsub.f32 %v2270_v36, %v224_v44  ;;  %v229_v47 = vsel %vm215_vm11, %v227_v45, 0.0 }
 0x1dc   :  { %230 = vadd.xlane.f32.xlu1 %v229_v47 }
 0x1dd   :  { %v228_v48 = vmul.f32 %v226_v46, %v226_v46 }
 0x1df   :  { %v232_v49 = vsel %vm215_vm11, %v228_v48, 0.0 }
 0x1e0   :  { %233 = vadd.xlane.f32.xlu1 %v232_v49 }
 0x265   :  { %v231_v52 = vpop.xlane.xlu1 %230 }
 0x266   :  { %v235_v53 = vmul.f32 0.03125, %v231_v52 }
 0x268   :  { %v237_v54 = vadd.f32 1e-12, %v235_v53 }
 0x269   :  { %v234_v55 = vpop.xlane.xlu1 %233 }
 0x26a   :  { %2515 = vrsqrt.f32 %v237_v54  ;;  %v236_v56 = vmul.f32 0.03125, %v234_v55 }
 0x26c   :  { %v238_v57 = vadd.f32 1e-12, %v236_v56 }
 0x26e   :  { %2517 = vrsqrt.f32 %v238_v57 }
 0x277   :  { %v2516_v58 = vpop.eup %2515 }
 0x278   :  { %v241_v59 = vmul.f32 %v2516_v58, %v225_v42 }
 0x27a   :  { %v247_v63 = vmul.f32 %v2118_v60, %v241_v59 }
 0x27b   :  { %v2518_v61 = vpop.eup %2517 }
 0x27c   :  { %v242_v62 = vmul.f32 %v2518_v61, %v226_v46  ;;  %v2760_v2 = vadd.f32 %v2119_v0, %v247_v63 }
 0x27e   :  { %v248_v1 = vmul.f32 %v2118_v60, %v242_v62 }
 0x280   :  { %v2762_v4 = vadd.f32 %v2119_v0, %v248_v1 }
 0x282   :  { %v255_v5 = vpack.c.bf16 %v2762_v4, %v2760_v2 }
 0x284   :  { %2276 = vmatmul.mubr.msk.bf16.vlgmr.msra.gmra.mxu1 %vm215_vm11, %v255_v5 }
 0x285   :  { %2281 = vmatprep.mubr.msk.bf16.mxu1 %vm2610_vm12, %v2609_v3 }
 0x344   :  { %v314_v6 = vpop.f32.mrf.mxu1 }
 0x345   :  { %v315_v10 = vadd.f32 %v2772_v7, %v314_v6 }
 0x346   :  { %v2277_v8 = vpop.f32.mrf.mxu1 }
 0x348   :  { %v317_v9 = vpop.f32.mrf.mxu1 }
 0x349   :  { %v318_v11 = vadd.f32 %v2772_v7, %v317_v9 }
 0x34a   :  { %v2278_v12 = vpop.f32.mrf.mxu1 }
 0x34b   :  { %v2776_v13 = vpack.c.bf16 %v318_v11, %v315_v10 }
 0x34d   :  { %575 = vrot.lane.b32.xlu0 %v2776_v13, %s2611_s28  ;;  %323 = vrot.lane.b32.xlu1 %v2776_v13, %s2612_s0 }
 0x351   :  { %450 = vrot.lane.b32.xlu1 %v2776_v13, %s2613_s29 }
 0x355   :  { %448 = vrot.lane.b32.xlu1 %v2776_v13, %s2614_s30 }
 0x359   :  { %573 = vrot.lane.b32.xlu1 %v2776_v13, %s2615_s7 }
 0x35d   :  { %700 = vrot.lane.b32.xlu1 %v2776_v13, %s2616_s8 }
 0x361   :  { %698 = vrot.lane.b32.xlu1 %v2776_v13, %s2617_s9 }
 0x3bf   :  { %v324_v14 = vpop.permute.xlu1 %323  ;;  %v576_v19 = vpop.permute.xlu0 %575 }
 0x3c0   :  { %v330_v15 = vsel %vm325_vm13, %v324_v14, 0  ;;  %v581_v21 = vsel %vm325_vm13, %v576_v19, 0 }
 0x3c1   :  { %2280 = vmatpush3.bf16.xpose.msra.mxu1 %v330_v15 }
 0x3c2   :  { %2291 = vmatprep.subr.bf16.mxu1 %v2609_v3 }
 0x3c3   :  { %v451_v16 = vpop.permute.xlu1 %450 }
 0x3c4   :  { %v456_v17 = vsel %vm325_vm13, %v451_v16, 0 }
 0x3c7   :  { %v449_v18 = vpop.permute.xlu1 %448 }
 0x3c8   :  { %2282 = vmatmul.mubr.msk.bf16.vlgmr.msra.gmra.mxu1 %vm325_vm13, %v2776_v13 }
 0x3c9   :  { %2292 = vmatpush3.bf16.xpose.msra.mxu1 %v456_v17  ;;  %2293 = vmatprep.mubr.msk.bf16.mxu1 %vm2610_vm12, %v2609_v3 }
 0x3ca   :  { %2303 = vmatprep.subr.bf16.mxu1 %v2609_v3 }
 0x3cb   :  { %v574_v20 = vpop.permute.xlu1 %573 }
 0x3cf   :  { %v701_v22 = vpop.permute.xlu1 %700 }
 0x3d0   :  { %2294 = vmatmul.mubr.msk.bf16.vlgmr.msra.gmra.mxu1 %vm325_vm13, %v449_v18  ;;  %v706_v23 = vsel %vm325_vm13, %v701_v22, 0 }
 0x3d1   :  { %2304 = vmatpush3.bf16.xpose.msra.mxu1 %v581_v21  ;;  %2305 = vmatprep.mubr.msk.bf16.mxu1 %vm2610_vm12, %v2609_v3 }
 0x3d2   :  { %2315 = vmatprep.subr.bf16.mxu1 %v2609_v3 }
 0x3d3   :  { %v699_v24 = vpop.permute.xlu1 %698 }
 0x3d8   :  { %2306 = vmatmul.mubr.msk.bf16.vlgmr.msra.gmra.mxu1 %vm325_vm13, %v574_v20 }
 0x3d9   :  { %2316 = vmatpush3.bf16.xpose.msra.mxu1 %v706_v23  ;;  %2317 = vmatprep.mubr.msk.bf16.mxu1 %vm2610_vm12, %v2609_v3 }
 0x3da   :  { %2327 = vmatprep.subr.bf16.mxu1 %v2609_v3 }
 0x3e0   :  { %2318 = vmatmul.mubr.msk.bf16.vlgmr.msra.gmra.mxu1 %vm325_vm13, %v699_v24 }
 0x3e1   :  { %2331 = vmatprep.mubr.msk.bf16.mxu1 %vm2610_vm12, %v2609_v3 }
 0x488   :  { %v366_v25 = vpop.f32.mrf.mxu1 }
 0x489   :  { %v373_v27 = vmul.f32 0.35355338, %v366_v25 }
 0x48a   :  { %v2283_v28 = vpop.f32.mrf.mxu1 }
 0x48b   :  { %v375_v29 = vadd.f32 %v373_v27, %v2816_v26 }
 0x48c   :  { %v369_v30 = vpop.f32.mrf.mxu1 }
 0x48d   :  { %v374_v32 = vmul.f32 0.35355338, %v369_v30  ;;  %v378_v33 = vsel %vm377_vm14, %v375_v29, -inf }
 0x48e   :  { %379 = vmax.xlane.f32.xlu1 %v378_v33  ;;  %v2284_v34 = vpop.f32.mrf.mxu1 }
 0x48f   :  { %v376_v35 = vadd.f32 %v374_v32, %v2822_v31 }
 0x490   :  { %v492_v36 = vpop.f32.mrf.mxu1 }
 0x491   :  { %v499_v37 = vmul.f32 0.35355338, %v492_v36  ;;  %v381_v38 = vsel %vm377_vm14, %v376_v35, -inf }
 0x492   :  { %382 = vmax.xlane.f32.xlu0 %v381_v38  ;;  %v2295_v39 = vpop.f32.mrf.mxu1 }
 0x493   :  { %v501_v40 = vadd.f32 %v499_v37, %v2816_v26 }
 0x494   :  { %v495_v41 = vpop.f32.mrf.mxu1 }
 0x495   :  { %v500_v42 = vmul.f32 0.35355338, %v495_v41  ;;  %v503_v43 = vsel %vm377_vm14, %v501_v40, -inf }
 0x496   :  { %504 = vmax.xlane.f32.xlu1 %v503_v43  ;;  %v2296_v44 = vpop.f32.mrf.mxu1 }
 0x497   :  { %v502_v45 = vadd.f32 %v500_v42, %v2822_v31 }
 0x498   :  { %v617_v46 = vpop.f32.mrf.mxu1 }
 0x499   :  { %v624_v47 = vmul.f32 0.35355338, %v617_v46  ;;  %v506_v48 = vsel %vm377_vm14, %v502_v45, -inf }
 0x49a   :  { %507 = vmax.xlane.f32.xlu1 %v506_v48  ;;  %v2307_v49 = vpop.f32.mrf.mxu1 }
 0x49b   :  { %v626_v52 = vadd.f32 %v624_v47, %v2816_v26 }
 0x49c   :  { %v620_v53 = vpop.f32.mrf.mxu1 }
 0x49d   :  { %v625_v54 = vmul.f32 0.35355338, %v620_v53  ;;  %v628_v55 = vsel %vm377_vm14, %v626_v52, -inf }
 0x49e   :  { %629 = vmax.xlane.f32.xlu1 %v628_v55  ;;  %v2308_v56 = vpop.f32.mrf.mxu1 }
 0x49f   :  { %v627_v57 = vadd.f32 %v625_v54, %v2822_v31 }
 0x4a0   :  { %v742_v58 = vpop.f32.mrf.mxu1 }
 0x4a1   :  { %v749_v59 = vmul.f32 0.35355338, %v742_v58  ;;  %v631_v60 = vsel %vm377_vm14, %v627_v57, -inf }
 0x4a2   :  { %632 = vmax.xlane.f32.xlu1 %v631_v60  ;;  %v2319_v61 = vpop.f32.mrf.mxu1 }
 0x4a3   :  { %v751_v62 = vadd.f32 %v749_v59, %v2816_v26 }
 0x4a4   :  { %v745_v63 = vpop.f32.mrf.mxu1 }
 0x4a5   :  { %v750_v0 = vmul.f32 0.35355338, %v745_v63  ;;  %v753_v1 = vsel %vm377_vm14, %v751_v62, -inf }
 0x4a6   :  { %754 = vmax.xlane.f32.xlu1 %v753_v1  ;;  %v2320_v5 = vpop.f32.mrf.mxu1 }
 0x4a7   :  { %v752_v6 = vadd.f32 %v750_v0, %v2822_v31 }
 0x4a9   :  { %v756_v8 = vsel %vm377_vm14, %v752_v6, -inf }
 0x4aa   :  { %757 = vmax.xlane.f32.xlu1 %v756_v8 }
 0x517   :  { %v380_v9 = vpop.xlane.xlu1 %379 }
 0x518   :  { %v384_v10 = vsub.f32 %v375_v29, %v380_v9 }
 0x51a   :  { %v386_v11 = vmul.f32 1.442695, %v384_v10 }
 0x51b   :  { %v383_v12 = vpop.xlane.xlu0 %382 }
 0x51c   :  { %2519 = vpow2.f32 %v386_v11  ;;  %v385_v14 = vsub.f32 %v376_v35, %v383_v12 }
 0x51e   :  { %v388_v15 = vmul.f32 1.442695, %v385_v14 }
 0x51f   :  { %v505_v16 = vpop.xlane.xlu1 %504 }
 0x520   :  { %2521 = vpow2.f32 %v388_v15  ;;  %v509_v17 = vsub.f32 %v501_v40, %v505_v16 }
 0x522   :  { %v511_v18 = vmul.f32 1.442695, %v509_v17 }
 0x523   :  { %v508_v25 = vpop.xlane.xlu1 %507 }
 0x524   :  { %2523 = vpow2.f32 %v511_v18  ;;  %v510_v30 = vsub.f32 %v502_v45, %v508_v25 }
 0x526   :  { %v513_v33 = vmul.f32 1.442695, %v510_v30 }
 0x527   :  { %v630_v27 = vpop.xlane.xlu1 %629 }
 0x528   :  { %v634_v32 = vsub.f32 %v626_v52, %v630_v27  ;;  %2525 = vpow2.f32 %v513_v33 }
 0x529   :  { %v2520_v19 = vpop.eup %2519 }
 0x52a   :  { %v390_v20 = vsel %vm377_vm14, %v2520_v19, 0.0  ;;  %v636_v36 = vmul.f32 1.442695, %v634_v32 }
 0x52b   :  { %391 = vadd.xlane.f32.xlu0 %v390_v20  ;;  %v633_v28 = vpop.xlane.xlu1 %632 }
 0x52c   :  { %v635_v34 = vsub.f32 %v627_v57, %v633_v28  ;;  %2527 = vpow2.f32 %v636_v36 }
 0x52d   :  { %v2522_v21 = vpop.eup %2521 }
 0x52e   :  { %v393_v22 = vsel %vm377_vm14, %v2522_v21, 0.0  ;;  %v638_v38 = vmul.f32 1.442695, %v635_v34 }
 0x52f   :  { %394 = vadd.xlane.f32.xlu1 %v393_v22  ;;  %v755_v29 = vpop.xlane.xlu1 %754 }
 0x530   :  { %v759_v37 = vsub.f32 %v751_v62, %v755_v29  ;;  %2529 = vpow2.f32 %v638_v38 }
 0x531   :  { %v2841_v23 = vpop.eup %2523 }
 0x532   :  { %v515_v24 = vsel %vm377_vm14, %v2841_v23, 0.0  ;;  %v761_v40 = vmul.f32 1.442695, %v759_v37 }
 0x533   :  { %516 = vadd.xlane.f32.xlu0 %v515_v24  ;;  %v758_v35 = vpop.xlane.xlu1 %757 }
 0x534   :  { %v760_v39 = vsub.f32 %v752_v6, %v758_v35  ;;  %2531 = vpow2.f32 %v761_v40  ;;  %v2882_v35 = vld [vmem:[%s3202_s5 + $0x18] sm:$0xff]   ;;  %v2890_v40 = vld [vmem:[%s3202_s5 + $0x10] sm:$0xff]  }
 0x535   :  { %v2526_v42 = vpop.eup %2525  ;;  %2328 = vmatpush3.bf16.msra.mxu1 %v2882_v35 }
 0x536   :  { %v763_v41 = vmul.f32 1.442695, %v760_v39  ;;  %v518_v44 = vsel %vm377_vm14, %v2526_v42, 0.0  ;;  %2329 = vmatprep.subr.bf16.mxu1 %v2609_v3 }
 0x538   :  { %2533 = vpow2.f32 %v763_v41 }
 0x539   :  { %v2528_v43 = vpop.eup %2527  ;;  %2330 = vmatpush3.bf16.msra.mxu1 %v2890_v40 }
 0x53a   :  { %v640_v47 = vsel %vm377_vm14, %v2528_v43, 0.0  ;;  %2343 = vmatprep.subr.bf16.mxu1 %v2609_v3 }
 0x53d   :  { %v2530_v45 = vpop.eup %2529 }
 0x53e   :  { %v643_v48 = vsel %vm377_vm14, %v2530_v45, 0.0 }
 0x540   :  { %526 = vrot.lane.b32.xlu1 %v2776_v13, %s2618_s2 }
 0x541   :  { %v2850_v46 = vpop.eup %2531 }
 0x542   :  { %v765_v52 = vsel %vm377_vm14, %v2850_v46, 0.0 }
 0x545   :  { %v2534_v49 = vpop.eup %2533 }
 0x546   :  { %v768_v53 = vsel %vm377_vm14, %v2534_v49, 0.0 }
 0x549   :  { %401 = vrot.lane.b32.xlu0 %v2776_v13, %s2619_s14 }
 0x564   :  { %519 = vadd.xlane.f32.xlu1 %v518_v44 }
 0x568   :  { %641 = vadd.xlane.f32.xlu0 %v640_v47  ;;  %644 = vadd.xlane.f32.xlu1 %v643_v48 }
 0x56c   :  { %766 = vadd.xlane.f32.xlu0 %v765_v52  ;;  %769 = vadd.xlane.f32.xlu1 %v768_v53 }
 0x57d   :  { %651 = vrot.lane.b32.xlu1 %v2776_v13, %s2620_s15 }
 0x582   :  { %776 = vrot.lane.b32.xlu0 %v2776_v13, %s2621_s16 }
 0x5b4   :  { %v392_v54 = vpop.xlane.xlu0 %391 }
 0x5b5   :  { %2535 = vrcp.f32 %v392_v54 }
 0x5b8   :  { %v395_v55 = vpop.xlane.xlu1 %394 }
 0x5b9   :  { %2537 = vrcp.f32 %v395_v55 }
 0x5bc   :  { %v517_v56 = vpop.xlane.xlu0 %516  ;;  %v527_v63 = vpop.permute.xlu1 %526 }
 0x5bd   :  { %2539 = vrcp.f32 %v517_v56 }
 0x5c0   :  { %v402_v57 = vpop.permute.xlu0 %401 }
 0x5c1   :  { %2286 = vmatpush3.bf16.msra.mxu0 %v402_v57 }
 0x5c2   :  { %2297 = vmatprep.subr.bf16.mxu0 %v2609_v3  ;;  %v2536_v58 = vpop.eup %2535 }
 0x5c3   :  { %v398_v60 = vmul.f32 %v2536_v58, %v2520_v19 }
 0x5c6   :  { %v2538_v59 = vpop.eup %2537 }
 0x5c7   :  { %v399_v61 = vmul.f32 %v2538_v59, %v2522_v21 }
 0x5c9   :  { %v400_v62 = vpack.c.bf16 %v399_v61, %v398_v60 }
 0x5ca   :  { %v2540_v8 = vpop.eup %2539 }
 0x5cb   :  { %2288 = vmatmul.mubr.msk.bf16.vlgmr.msra.gmra.mxu0 %vm377_vm14, %v400_v62  ;;  %v523_v10 = vmul.f32 %v2540_v8, %v2841_v23 }
 0x5cc   :  { %2298 = vmatpush3.bf16.msra.mxu0 %v527_v63  ;;  %2299 = vmatprep.mubr.msk.bf16.mxu0 %vm2610_vm12, %v2609_v3 }
 0x5cd   :  { %2309 = vmatprep.subr.bf16.mxu0 %v2609_v3 }
 0x5ed   :  { %v520_v13 = vpop.xlane.xlu1 %519 }
 0x5ee   :  { %2541 = vrcp.f32 %v520_v13 }
 0x5f1   :  { %v642_v0 = vpop.xlane.xlu0 %641  ;;  %v645_v1 = vpop.xlane.xlu1 %644 }
 0x5f2   :  { %2543 = vrcp.f32 %v642_v0 }
 0x5f3   :  { %2545 = vrcp.f32 %v645_v1 }
 0x5f5   :  { %v767_v5 = vpop.xlane.xlu0 %766  ;;  %v770_v6 = vpop.xlane.xlu1 %769 }
 0x5f6   :  { %2547 = vrcp.f32 %v767_v5  ;;  %v2908_v5 = vld [vmem:[%s3203_s4 + $0x3] ss:$0 sm:$0xff] }
 0x5f7   :  { %2549 = vrcp.f32 %v770_v6 }
 0x5f9   :  { %v652_v16 = vpop.permute.xlu1 %651  ;;  %v777_v22 = vpop.permute.xlu0 %776 }
 0x5fb   :  { %v2542_v9 = vpop.eup %2541 }
 0x5fc   :  { %v524_v11 = vmul.f32 %v2542_v9, %v2526_v42 }
 0x5fe   :  { %v525_v12 = vpack.c.bf16 %v524_v11, %v523_v10 }
 0x5ff   :  { %v2544_v14 = vpop.eup %2543 }
 0x600   :  { %v2546_v15 = vpop.eup %2545  ;;  %2300 = vmatmul.mubr.msk.bf16.vlgmr.msra.gmra.mxu0 %vm377_vm14, %v525_v12  ;;  %v648_v17 = vmul.f32 %v2544_v14, %v2528_v43 }
 0x601   :  { %2310 = vmatpush3.bf16.msra.mxu0 %v652_v16  ;;  %2311 = vmatprep.mubr.msk.bf16.mxu0 %vm2610_vm12, %v2609_v3  ;;  %v649_v18 = vmul.f32 %v2546_v15, %v2530_v45 }
 0x602   :  { %2321 = vmatprep.subr.bf16.mxu0 %v2609_v3 }
 0x603   :  { %v2548_v19 = vpop.eup %2547  ;;  %v650_v20 = vpack.c.bf16 %v649_v18, %v648_v17 }
 0x604   :  { %v2550_v21 = vpop.eup %2549  ;;  %v773_v23 = vmul.f32 %v2548_v19, %v2850_v46 }
 0x605   :  { %v774_v24 = vmul.f32 %v2550_v21, %v2534_v49 }
 0x607   :  { %v775_v25 = vpack.c.bf16 %v774_v24, %v773_v23 }
 0x608   :  { %2312 = vmatmul.mubr.msk.bf16.vlgmr.msra.gmra.mxu0 %vm377_vm14, %v650_v20 }
 0x609   :  { %2322 = vmatpush3.bf16.msra.mxu0 %v777_v22  ;;  %2323 = vmatprep.mubr.msk.bf16.mxu0 %vm2610_vm12, %v2609_v3 }
 0x60a   :  { %2335 = vmatprep.subr.bf16.mxu0 %v2609_v3 }
 0x610   :  { %2324 = vmatmul.mubr.msk.bf16.vlgmr.msra.gmra.mxu0 %vm377_vm14, %v775_v25 }
 0x611   :  { %2339 = vmatprep.mubr.msk.bf16.mxu0 %vm2610_vm12, %v2609_v3 }
 0x68b   :  { %v441_v27 = vpop.f32.mrf.mxu0 }
 0x68d   :  { %v2289_v28 = vpop.f32.mrf.mxu0 }
 0x68e   :  { %v2927_v28 = vld [vmem:[%s3202_s5 + $0x20] sm:$0xff]  }
 0x68f   :  { %v444_v29 = vpop.f32.mrf.mxu0 }
 0x691   :  { %v2290_v30 = vpop.f32.mrf.mxu0 }
 0x6c0   :  { %v566_v32 = vpop.f32.mrf.mxu0 }
 0x6c2   :  { %v2301_v33 = vpop.f32.mrf.mxu0 }
 0x6c4   :  { %v569_v34 = vpop.f32.mrf.mxu0 }
 0x6c5   :  { %v2471_v36 = vpack.i.bf16 %v569_v34, %v566_v32 }
 0x6c6   :  { %v2302_v37 = vpop.f32.mrf.mxu0 }
 0x6c7   :  { %2472 = vrot.lane.b32.xlu1 %v2471_v36, %s2622_s18 }
 0x6c8   :  { %v691_v38 = vpop.f32.mrf.mxu0 }
 0x6ca   :  { %v2313_v39 = vpop.f32.mrf.mxu0 }
 0x6cb   :  { %v2935_v39 = vld [vmem:[%s3203_s4 + $0x4] ss:$0 sm:$0xff] }
 0x6cc   :  { %v694_v41 = vpop.f32.mrf.mxu0 }
 0x6cd   :  { %v2476_v42 = vpack.i.bf16 %v694_v41, %v691_v38 }
 0x6ce   :  { %v2314_v43 = vpop.f32.mrf.mxu0 }
 0x6cf   :  { %2477 = vrot.lane.b32.xlu0 %v2476_v42, %s2623_s20 }
 0x6d0   :  { %v816_v44 = vpop.f32.mrf.mxu0 }
 0x6d2   :  { %v2325_v45 = vpop.f32.mrf.mxu0 }
 0x6d4   :  { %v819_v46 = vpop.f32.mrf.mxu0 }
 0x6d5   :  { %v2481_v47 = vpack.i.bf16 %v819_v46, %v816_v44  ;;  %v2941_v44 = vld [vmem:[%s3203_s4 + $0x5] ss:$0 sm:$0xff] }
 0x6d6   :  { %v2326_v48 = vpop.f32.mrf.mxu0 }
 0x6d7   :  { %2482 = vrot.lane.b32.xlu1 %v2481_v47, %s2624_s21 }
 0x739   :  { %v2473_v49 = vpop.permute.xlu1 %2472 }
 0x73a   :  { %v2475_v53 = vunpack.i.h.bf16 %v2473_v49  ;;  %v2474_v54 = vunpack.i.l.bf16 %v2473_v49  ;;  %v2956_v49 = vld [vmem:[%s3202_s5 + $0x48] sm:$0xff]  }
 0x73c   :  { %v848_v58 = vsel %vm325_vm13, %v444_v29, %v2475_v53  ;;  %v847_v59 = vsel %vm325_vm13, %v441_v27, %v2474_v54  ;;  %v2984_v53 = vld [vmem:[%s3203_s4 + $0x6] ss:$0 sm:$0xff] }
 0x741   :  { %v2478_v52 = vpop.permute.xlu0 %2477 }
 0x742   :  { %v2480_v55 = vunpack.i.h.bf16 %v2478_v52  ;;  %v2479_v56 = vunpack.i.l.bf16 %v2478_v52  ;;  %v2977_v52 = vld [vmem:[%s3202_s5 + $0x30] sm:$0xff]  }
 0x744   :  { %v849_v62 = vsel %vm377_vm14, %v847_v59, %v2479_v56  ;;  %v850_v63 = vsel %vm377_vm14, %v848_v58, %v2480_v55 }
 0x749   :  { %v2483_v57 = vpop.permute.xlu1 %2482 }
 0x74a   :  { %v2485_v60 = vunpack.i.h.bf16 %v2483_v57  ;;  %v2484_v61 = vunpack.i.l.bf16 %v2483_v57 }
 0x74c   :  { %v852_v13 = vsel %vm851_vm15, %v849_v62, %v2484_v61  ;;  %v853_v0 = vsel %vm851_vm15, %v850_v63, %v2485_v60 }
 0x74d   :  { %v854_v1 = vpack.c.bf16 %v853_v0, %v852_v13 }
 0x74f   :  { %2332 = vmatmul.mubr.msk.bf16.vlgmr.msra.gmra.mxu1 %vm215_vm11, %v854_v1 }
 0x750   :  { %2351 = vmatprep.mubr.msk.bf16.mxu1 %vm2610_vm12, %v2609_v3  ;;  %2344 = vmatpush3.bf16.msra.mxu1 %v2956_v49 }
 0x751   :  { %2345 = vmatprep.subr.bf16.mxu1 %v2609_v3 }
 0x80f   :  { %v913_v6 = vpop.f32.mrf.mxu1 }
 0x810   :  { %v914_v8 = vadd.f32 %v2908_v5, %v913_v6 }
 0x811   :  { %v2333_v9 = vpop.f32.mrf.mxu1 }
 0x812   :  { %v920_v10 = vadd.f32 %v914_v8, %v2760_v2 }
 0x813   :  { %v916_v11 = vpop.f32.mrf.mxu1 }
 0x814   :  { %v917_v12 = vadd.f32 %v2908_v5, %v916_v11  ;;  %v924_v14 = vsel %vm215_vm11, %v920_v10, 0.0 }
 0x815   :  { %925 = vadd.xlane.f32.xlu0 %v924_v14  ;;  %v2334_v15 = vpop.f32.mrf.mxu1 }
 0x816   :  { %v921_v16 = vadd.f32 %v917_v12, %v2762_v4  ;;  %v2921_v4 = vld [vmem:[%s3202_s5 + $0x28] sm:$0xff]  }
 0x817   :  { %2336 = vmatpush3.bf16.msra.mxu0 %v2921_v4 }
 0x818   :  { %v927_v17 = vsel %vm215_vm11, %v921_v16, 0.0  ;;  %2337 = vmatprep.subr.bf16.mxu0 %v2609_v3 }
 0x819   :  { %928 = vadd.xlane.f32.xlu1 %v927_v17 }
 0x81b   :  { %2338 = vmatpush3.bf16.msra.mxu0 %v2927_v28 }
 0x81c   :  { %2355 = vmatprep.subr.bf16.mxu0 %v2609_v3 }
 0x89e   :  { %v926_v18 = vpop.xlane.xlu0 %925 }
 0x89f   :  { %v930_v19 = vmul.f32 0.03125, %v926_v18 }
 0x8a1   :  { %v932_v20 = vsub.f32 %v920_v10, %v930_v19 }
 0x8a2   :  { %v929_v21 = vpop.xlane.xlu1 %928 }
 0x8a3   :  { %v931_v22 = vmul.f32 0.03125, %v929_v21  ;;  %v934_v23 = vmul.f32 %v932_v20, %v932_v20 }
 0x8a5   :  { %v933_v24 = vsub.f32 %v921_v16, %v931_v22  ;;  %v936_v2 = vsel %vm215_vm11, %v934_v23, 0.0 }
 0x8a6   :  { %937 = vadd.xlane.f32.xlu0 %v936_v2 }
 0x8a7   :  { %v935_v25 = vmul.f32 %v933_v24, %v933_v24 }
 0x8a9   :  { %v939_v27 = vsel %vm215_vm11, %v935_v25, 0.0 }
 0x8aa   :  { %940 = vadd.xlane.f32.xlu0 %v939_v27 }
 0x92f   :  { %v938_v29 = vpop.xlane.xlu0 %937 }
 0x930   :  { %v942_v30 = vmul.f32 0.03125, %v938_v29 }
 0x932   :  { %v944_v32 = vadd.f32 1e-12, %v942_v30 }
 0x933   :  { %v941_v33 = vpop.xlane.xlu0 %940 }
 0x934   :  { %2551 = vrsqrt.f32 %v944_v32  ;;  %v943_v34 = vmul.f32 0.03125, %v941_v33 }
 0x936   :  { %v945_v36 = vadd.f32 1e-12, %v943_v34 }
 0x938   :  { %2553 = vrsqrt.f32 %v945_v36 }
 0x941   :  { %v2552_v37 = vpop.eup %2551 }
 0x942   :  { %v948_v38 = vmul.f32 %v2552_v37, %v932_v20  ;;  %v2994_v20 = vld [vmem:[%s3203_s4 + $0x7] ss:$0 sm:$0xff] }
 0x944   :  { %v954_v43 = vmul.f32 %v2935_v39, %v948_v38 }
 0x945   :  { %v2554_v41 = vpop.eup %2553 }
 0x946   :  { %v949_v42 = vmul.f32 %v2554_v41, %v933_v24  ;;  %v960_v46 = vadd.f32 %v2941_v44, %v954_v43 }
 0x948   :  { %v955_v45 = vmul.f32 %v2935_v39, %v949_v42 }
 0x94a   :  { %v961_v47 = vadd.f32 %v2941_v44, %v955_v45 }
 0x94c   :  { %v962_v48 = vpack.c.bf16 %v961_v47, %v960_v46 }
 0x94e   :  { %2340 = vmatmul.mubr.msk.bf16.vlgmr.msra.gmra.mxu0 %vm215_vm11, %v962_v48 }
 0x94f   :  { %2356 = vmatpush3.bf16.msra.mxu0 %v2739_v50  ;;  %2359 = vmatprep.mubr.msk.bf16.mxu0 %vm2610_vm12, %v2609_v3  ;;  %v2963_v50 = vld [vmem:[%s3202_s5 + $0x40] sm:$0xff]  }
 0x950   :  { %2357 = vmatprep.subr.bf16.mxu0 %v2609_v3  ;;  %2346 = vmatpush3.bf16.msra.mxu1 %v2963_v50 }
 0x951   :  { %2347 = vmatprep.subr.bf16.mxu1 %v2609_v3 }
 0x953   :  { %2358 = vmatpush3.bf16.msra.mxu0 %v2749_v51  ;;  %v2970_v51 = vld [vmem:[%s3202_s5 + $0x38] sm:$0xff]  }
 0x954   :  { %2363 = vmatprep.subr.bf16.mxu0 %v2609_v3  ;;  %2348 = vmatpush3.bf16.msra.mxu1 %v2970_v51 }
 0x955   :  { %2349 = vmatprep.subr.bf16.mxu1 %v2609_v3 }
 0x958   :  { %2350 = vmatpush3.bf16.msra.mxu1 %v2977_v52 }
 0x959   :  { %2369 = vmatprep.subr.bf16.mxu1 %v2609_v3 }
 0xa0e   :  { %v1021_v54 = vpop.f32.mrf.mxu0 }
 0xa0f   :  { %v1022_v55 = vadd.f32 %v2984_v53, %v1021_v54 }
 0xa10   :  { %v2341_v56 = vpop.f32.mrf.mxu0 }
 0xa11   :  { %v1028_v57 = vmul.f32 %v1022_v55, %v1022_v55 }
 0xa12   :  { %v1024_v58 = vpop.f32.mrf.mxu0 }
 0xa13   :  { %v1030_v59 = vmul.f32 %v1028_v57, %v1022_v55  ;;  %v1025_v60 = vadd.f32 %v2984_v53, %v1024_v58 }
 0xa14   :  { %v2342_v61 = vpop.f32.mrf.mxu0 }
 0xa15   :  { %v1032_v62 = vmul.f32 0.044715, %v1030_v59  ;;  %v1029_v63 = vmul.f32 %v1025_v60, %v1025_v60 }
 0xa17   :  { %v1034_v13 = vadd.f32 %v1032_v62, %v1022_v55  ;;  %v1031_v0 = vmul.f32 %v1029_v63, %v1025_v60 }
 0xa19   :  { %v1036_v1 = vmul.f32 0.7978846, %v1034_v13  ;;  %v1033_v6 = vmul.f32 0.044715, %v1031_v0  ;;  %v3011_v13 = vld [vmem:[%s3203_s4 + $0x9] ss:$0 sm:$0xff] }
 0xa1b   :  { %2555 = vtanh.f32 %v1036_v1  ;;  %v1035_v8 = vadd.f32 %v1033_v6, %v1025_v60 }
 0xa1d   :  { %v1037_v9 = vmul.f32 0.7978846, %v1035_v8 }
 0xa1f   :  { %2557 = vtanh.f32 %v1037_v9 }
 0xa28   :  { %v2556_v10 = vpop.eup %2555 }
 0xa29   :  { %v1040_v11 = vadd.f32 1.0, %v2556_v10 }
 0xa2b   :  { %v1042_v14 = vmul.f32 0.5, %v1040_v11 }
 0xa2c   :  { %v2558_v12 = vpop.eup %2557 }
 0xa2d   :  { %v1041_v15 = vadd.f32 1.0, %v2558_v12  ;;  %v1044_v17 = vmul.f32 %v1042_v14, %v1022_v55 }
 0xa2f   :  { %v1043_v16 = vmul.f32 0.5, %v1041_v15 }
 0xa31   :  { %v1045_v18 = vmul.f32 %v1043_v16, %v1025_v60  ;;  %v3005_v60 = vld [vmem:[%s3203_s4 + $0x8] ss:$0 sm:$0xff] }
 0xa33   :  { %v1046_v19 = vpack.c.bf16 %v1045_v18, %v1044_v17 }
 0xa35   :  { %2352 = vmatmul.mubr.msk.bf16.vlgmr.msra.gmra.mxu1 %vm1084_vm0, %v1046_v19 }
 0xa36   :  { %2371 = vmatprep.mubr.msk.bf16.mxu1 %vm2610_vm12, %v2609_v3 }
 0xaf5   :  { %v1122_v21 = vpop.f32.mrf.mxu1 }
 0xaf6   :  { %v1123_v22 = vadd.f32 %v2994_v20, %v1122_v21 }
 0xaf7   :  { %v2353_v23 = vpop.f32.mrf.mxu1 }
 0xaf8   :  { %v1129_v24 = vadd.f32 %v1123_v22, %v960_v46 }
 0xaf9   :  { %v1125_v2 = vpop.f32.mrf.mxu1 }
 0xafa   :  { %v1126_v25 = vadd.f32 %v2994_v20, %v1125_v2  ;;  %v1133_v27 = vsel %vm215_vm11, %v1129_v24, 0.0 }
 0xafb   :  { %1134 = vadd.xlane.f32.xlu1 %v1133_v27  ;;  %v2354_v29 = vpop.f32.mrf.mxu1 }
 0xafc   :  { %v1130_v30 = vadd.f32 %v1126_v25, %v961_v47 }
 0xafe   :  { %v1136_v32 = vsel %vm215_vm11, %v1130_v30, 0.0 }
 0xaff   :  { %1137 = vadd.xlane.f32.xlu0 %v1136_v32 }
 0xb84   :  { %v1135_v33 = vpop.xlane.xlu1 %1134 }
 0xb85   :  { %v1139_v34 = vmul.f32 0.03125, %v1135_v33 }
 0xb87   :  { %v1141_v36 = vsub.f32 %v1129_v24, %v1139_v34 }
 0xb88   :  { %v1138_v37 = vpop.xlane.xlu0 %1137 }
 0xb89   :  { %v1140_v38 = vmul.f32 0.03125, %v1138_v37  ;;  %v1143_v41 = vmul.f32 %v1141_v36, %v1141_v36 }
 0xb8b   :  { %v1142_v42 = vsub.f32 %v1130_v30, %v1140_v38  ;;  %v1145_v43 = vsel %vm215_vm11, %v1143_v41, 0.0 }
 0xb8c   :  { %1146 = vadd.xlane.f32.xlu1 %v1145_v43 }
 0xb8d   :  { %v1144_v45 = vmul.f32 %v1142_v42, %v1142_v42 }
 0xb8f   :  { %v1148_v46 = vsel %vm215_vm11, %v1144_v45, 0.0 }
 0xb90   :  { %1149 = vadd.xlane.f32.xlu0 %v1148_v46 }
 0xc15   :  { %v1147_v48 = vpop.xlane.xlu1 %1146 }
 0xc16   :  { %v1151_v54 = vmul.f32 0.03125, %v1147_v48 }
 0xc18   :  { %v1153_v47 = vadd.f32 1e-12, %v1151_v54 }
 0xc19   :  { %v1150_v55 = vpop.xlane.xlu0 %1149 }
 0xc1a   :  { %2559 = vrsqrt.f32 %v1153_v47  ;;  %v1152_v56 = vmul.f32 0.03125, %v1150_v55 }
 0xc1c   :  { %v1154_v57 = vadd.f32 1e-12, %v1152_v56 }
 0xc1e   :  { %2561 = vrsqrt.f32 %v1154_v57 }
 0xc27   :  { %v2560_v58 = vpop.eup %2559 }
 0xc28   :  { %v1157_v59 = vmul.f32 %v2560_v58, %v1141_v36 }
 0xc2a   :  { %v1163_v63 = vmul.f32 %v3005_v60, %v1157_v59 }
 0xc2b   :  { %v2562_v61 = vpop.eup %2561 }
 0xc2c   :  { %v1158_v62 = vmul.f32 %v2562_v61, %v1142_v42  ;;  %v3015_v1 = vadd.f32 %v3011_v13, %v1163_v63 }
 0xc2e   :  { %v1164_v0 = vmul.f32 %v3005_v60, %v1158_v62 }
 0xc30   :  { %v3018_v6 = vadd.f32 %v3011_v13, %v1164_v0 }
 0xc32   :  { %v1171_v8 = vpack.c.bf16 %v3018_v6, %v3015_v1 }
 0xc34   :  { %2360 = vmatmul.mubr.msk.bf16.vlgmr.msra.gmra.mxu0 %vm215_vm11, %v1171_v8 }
 0xc35   :  { %2365 = vmatprep.mubr.msk.bf16.mxu0 %vm2610_vm12, %v2609_v3 }
 0xcf4   :  { %v1209_v9 = vpop.f32.mrf.mxu0 }
 0xcf5   :  { %v1210_v12 = vadd.f32 %v2772_v7, %v1209_v9 }
 0xcf6   :  { %v2361_v10 = vpop.f32.mrf.mxu0 }
 0xcf8   :  { %v1212_v11 = vpop.f32.mrf.mxu0 }
 0xcf9   :  { %v1213_v14 = vadd.f32 %v2772_v7, %v1212_v11 }
 0xcfa   :  { %v2362_v15 = vpop.f32.mrf.mxu0 }
 0xcfb   :  { %v3027_v16 = vpack.c.bf16 %v1213_v14, %v1210_v12 }
 0xcfd   :  { %1343 = vrot.lane.b32.xlu0 %v3027_v16, %s2613_s29  ;;  %1218 = vrot.lane.b32.xlu1 %v3027_v16, %s2612_s0 }
 0xd01   :  { %1466 = vrot.lane.b32.xlu0 %v3027_v16, %s2615_s7  ;;  %1341 = vrot.lane.b32.xlu1 %v3027_v16, %s2614_s30 }
 0xd05   :  { %1591 = vrot.lane.b32.xlu0 %v3027_v16, %s2617_s9  ;;  %1468 = vrot.lane.b32.xlu1 %v3027_v16, %s2611_s28 }
 0xd09   :  { %1593 = vrot.lane.b32.xlu1 %v3027_v16, %s2616_s8 }
 0xd6f   :  { %v1219_v7 = vpop.permute.xlu1 %1218  ;;  %v1344_v18 = vpop.permute.xlu0 %1343 }
 0xd70   :  { %v1224_v17 = vsel %vm325_vm13, %v1219_v7, 0  ;;  %v1349_v21 = vsel %vm325_vm13, %v1344_v18, 0 }
 0xd71   :  { %2364 = vmatpush3.bf16.xpose.msra.mxu0 %v1224_v17 }
 0xd72   :  { %2375 = vmatprep.subr.bf16.mxu0 %v2609_v3 }
 0xd73   :  { %v1342_v19 = vpop.permute.xlu1 %1341  ;;  %v1467_v2 = vpop.permute.xlu0 %1466 }
 0xd77   :  { %v1469_v22 = vpop.permute.xlu1 %1468  ;;  %v1592_v27 = vpop.permute.xlu0 %1591 }
 0xd78   :  { %2366 = vmatmul.mubr.msk.bf16.vlgmr.msra.gmra.mxu0 %vm325_vm13, %v3027_v16  ;;  %v1474_v23 = vsel %vm325_vm13, %v1469_v22, 0 }
 0xd79   :  { %2376 = vmatpush3.bf16.xpose.msra.mxu0 %v1349_v21  ;;  %2377 = vmatprep.mubr.msk.bf16.mxu0 %vm2610_vm12, %v2609_v3 }
 0xd7a   :  { %2387 = vmatprep.subr.bf16.mxu0 %v2609_v3 }
 0xd7b   :  { %v1594_v24 = vpop.permute.xlu1 %1593 }
 0xd7c   :  { %v1599_v25 = vsel %vm325_vm13, %v1594_v24, 0 }
 0xd80   :  { %2378 = vmatmul.mubr.msk.bf16.vlgmr.msra.gmra.mxu0 %vm325_vm13, %v1342_v19 }
 0xd81   :  { %2388 = vmatpush3.bf16.xpose.msra.mxu0 %v1474_v23  ;;  %2389 = vmatprep.mubr.msk.bf16.mxu0 %vm2610_vm12, %v2609_v3 }
 0xd82   :  { %2399 = vmatprep.subr.bf16.mxu0 %v2609_v3 }
 0xd88   :  { %2390 = vmatmul.mubr.msk.bf16.vlgmr.msra.gmra.mxu0 %vm325_vm13, %v1467_v2 }
 0xd89   :  { %2400 = vmatpush3.bf16.xpose.msra.mxu0 %v1599_v25  ;;  %2401 = vmatprep.mubr.msk.bf16.mxu0 %vm2610_vm12, %v2609_v3 }
 0xd8a   :  { %2411 = vmatprep.subr.bf16.mxu0 %v2609_v3 }
 0xd90   :  { %2402 = vmatmul.mubr.msk.bf16.vlgmr.msra.gmra.mxu0 %vm325_vm13, %v1592_v27 }
 0xd91   :  { %2412 = vmatpush3.bf16.msra.mxu0 %v2882_v35  ;;  %2415 = vmatprep.mubr.msk.bf16.mxu0 %vm2610_vm12, %v2609_v3 }
 0xd92   :  { %2413 = vmatprep.subr.bf16.mxu0 %v2609_v3 }
 0xd95   :  { %2414 = vmatpush3.bf16.msra.mxu0 %v2890_v40 }
 0xd96   :  { %2427 = vmatprep.subr.bf16.mxu0 %v2609_v3 }
 0xe38   :  { %v1260_v29 = vpop.f32.mrf.mxu0 }
 0xe39   :  { %v1267_v30 = vmul.f32 0.35355338, %v1260_v29 }
 0xe3a   :  { %v2367_v32 = vpop.f32.mrf.mxu0 }
 0xe3b   :  { %v1269_v33 = vadd.f32 %v1267_v30, %v2816_v26 }
 0xe3c   :  { %v1263_v34 = vpop.f32.mrf.mxu0 }
 0xe3d   :  { %v1268_v36 = vmul.f32 0.35355338, %v1263_v34  ;;  %v1271_v37 = vsel %vm377_vm14, %v1269_v33, -inf }
 0xe3e   :  { %1272 = vmax.xlane.f32.xlu1 %v1271_v37  ;;  %v2368_v35 = vpop.f32.mrf.mxu0 }
 0xe3f   :  { %v1270_v38 = vadd.f32 %v1268_v36, %v2822_v31 }
 0xe40   :  { %v1385_v41 = vpop.f32.mrf.mxu0 }
 0xe41   :  { %v1392_v42 = vmul.f32 0.35355338, %v1385_v41  ;;  %v1274_v43 = vsel %vm377_vm14, %v1270_v38, -inf }
 0xe42   :  { %1275 = vmax.xlane.f32.xlu0 %v1274_v43  ;;  %v2379_v40 = vpop.f32.mrf.mxu0 }
 0xe43   :  { %v1394_v45 = vadd.f32 %v1392_v42, %v2816_v26 }
 0xe44   :  { %v1388_v46 = vpop.f32.mrf.mxu0 }
 0xe45   :  { %v1393_v48 = vmul.f32 0.35355338, %v1388_v46  ;;  %v1396_v54 = vsel %vm377_vm14, %v1394_v45, -inf }
 0xe46   :  { %1397 = vmax.xlane.f32.xlu0 %v1396_v54  ;;  %v2380_v47 = vpop.f32.mrf.mxu0 }
 0xe47   :  { %v1395_v55 = vadd.f32 %v1393_v48, %v2822_v31 }
 0xe48   :  { %v1510_v56 = vpop.f32.mrf.mxu0 }
 0xe49   :  { %v1517_v57 = vmul.f32 0.35355338, %v1510_v56  ;;  %v1399_v58 = vsel %vm377_vm14, %v1395_v55, -inf }
 0xe4a   :  { %1400 = vmax.xlane.f32.xlu1 %v1399_v58  ;;  %v2391_v59 = vpop.f32.mrf.mxu0 }
 0xe4b   :  { %v1519_v61 = vadd.f32 %v1517_v57, %v2816_v26 }
 0xe4c   :  { %v1513_v62 = vpop.f32.mrf.mxu0 }
 0xe4d   :  { %v1518_v63 = vmul.f32 0.35355338, %v1513_v62  ;;  %v1521_v0 = vsel %vm377_vm14, %v1519_v61, -inf }
 0xe4e   :  { %1522 = vmax.xlane.f32.xlu0 %v1521_v0  ;;  %v2392_v8 = vpop.f32.mrf.mxu0 }
 0xe4f   :  { %v1520_v9 = vadd.f32 %v1518_v63, %v2822_v31 }
 0xe50   :  { %v1635_v10 = vpop.f32.mrf.mxu0 }
 0xe51   :  { %v1642_v11 = vmul.f32 0.35355338, %v1635_v10  ;;  %v1524_v12 = vsel %vm377_vm14, %v1520_v9, -inf }
 0xe52   :  { %1525 = vmax.xlane.f32.xlu1 %v1524_v12  ;;  %v2403_v14 = vpop.f32.mrf.mxu0 }
 0xe53   :  { %v1644_v15 = vadd.f32 %v1642_v11, %v2816_v26 }
 0xe54   :  { %v1638_v7 = vpop.f32.mrf.mxu0 }
 0xe55   :  { %v1643_v17 = vmul.f32 0.35355338, %v1638_v7  ;;  %v1646_v18 = vsel %vm377_vm14, %v1644_v15, -inf }
 0xe56   :  { %1647 = vmax.xlane.f32.xlu0 %v1646_v18  ;;  %v2404_v19 = vpop.f32.mrf.mxu0 }
 0xe57   :  { %v1645_v21 = vadd.f32 %v1643_v17, %v2822_v31 }
 0xe59   :  { %v1649_v22 = vsel %vm377_vm14, %v1645_v21, -inf }
 0xe5a   :  { %1650 = vmax.xlane.f32.xlu1 %v1649_v22 }
 0xec7   :  { %v1273_v23 = vpop.xlane.xlu1 %1272 }
 0xec8   :  { %v1277_v24 = vsub.f32 %v1269_v33, %v1273_v23 }
 0xeca   :  { %v1279_v2 = vmul.f32 1.442695, %v1277_v24 }
 0xecb   :  { %v1276_v25 = vpop.xlane.xlu0 %1275 }
 0xecc   :  { %2563 = vpow2.f32 %v1279_v2  ;;  %v1278_v27 = vsub.f32 %v1270_v38, %v1276_v25 }
 0xece   :  { %v1281_v29 = vmul.f32 1.442695, %v1278_v27 }
 0xecf   :  { %v1398_v30 = vpop.xlane.xlu0 %1397 }
 0xed0   :  { %2565 = vpow2.f32 %v1281_v29  ;;  %v1402_v26 = vsub.f32 %v1394_v45, %v1398_v30 }
 0xed2   :  { %v1404_v32 = vmul.f32 1.442695, %v1402_v26 }
 0xed3   :  { %v1401_v38 = vpop.xlane.xlu1 %1400 }
 0xed4   :  { %2567 = vpow2.f32 %v1404_v32  ;;  %v1403_v41 = vsub.f32 %v1395_v55, %v1401_v38 }
 0xed6   :  { %v1406_v45 = vmul.f32 1.442695, %v1403_v41 }
 0xed7   :  { %v1523_v42 = vpop.xlane.xlu0 %1522 }
 0xed8   :  { %v1527_v40 = vsub.f32 %v1519_v61, %v1523_v42  ;;  %2569 = vpow2.f32 %v1406_v45 }
 0xed9   :  { %v2564_v34 = vpop.eup %2563 }
 0xeda   :  { %v1283_v36 = vsel %vm377_vm14, %v2564_v34, 0.0  ;;  %v1529_v47 = vmul.f32 1.442695, %v1527_v40 }
 0xedb   :  { %1284 = vadd.xlane.f32.xlu0 %v1283_v36  ;;  %v1526_v43 = vpop.xlane.xlu1 %1525 }
 0xedc   :  { %v1528_v46 = vsub.f32 %v1520_v9, %v1526_v43  ;;  %2571 = vpow2.f32 %v1529_v47 }
 0xedd   :  { %v2566_v31 = vpop.eup %2565 }
 0xede   :  { %v1286_v37 = vsel %vm377_vm14, %v2566_v31, 0.0  ;;  %v1531_v57 = vmul.f32 1.442695, %v1528_v46 }
 0xedf   :  { %1287 = vadd.xlane.f32.xlu1 %v1286_v37  ;;  %v1648_v48 = vpop.xlane.xlu0 %1647 }
 0xee0   :  { %v1652_v56 = vsub.f32 %v1644_v15, %v1648_v48  ;;  %2573 = vpow2.f32 %v1531_v57 }
 0xee1   :  { %v3086_v35 = vpop.eup %2567 }
 0xee2   :  { %v1408_v33 = vsel %vm377_vm14, %v3086_v35, 0.0  ;;  %v1654_v59 = vmul.f32 1.442695, %v1652_v56 }
 0xee3   :  { %1409 = vadd.xlane.f32.xlu0 %v1408_v33  ;;  %v1651_v54 = vpop.xlane.xlu1 %1650 }
 0xee4   :  { %v1653_v58 = vsub.f32 %v1645_v21, %v1651_v54  ;;  %2575 = vpow2.f32 %v1654_v59 }
 0xee5   :  { %v2570_v63 = vpop.eup %2569 }
 0xee6   :  { %v1656_v62 = vmul.f32 1.442695, %v1653_v58  ;;  %v1411_v0 = vsel %vm377_vm14, %v2570_v63, 0.0 }
 0xee8   :  { %2577 = vpow2.f32 %v1656_v62 }
 0xee9   :  { %v2572_v55 = vpop.eup %2571 }
 0xeea   :  { %v1533_v9 = vsel %vm377_vm14, %v2572_v55, 0.0 }
 0xeed   :  { %v2574_v61 = vpop.eup %2573 }
 0xeee   :  { %v1536_v10 = vsel %vm377_vm14, %v2574_v61, 0.0 }
 0xef0   :  { %1419 = vrot.lane.b32.xlu1 %v3027_v16, %s2618_s2 }
 0xef1   :  { %v2576_v8 = vpop.eup %2575 }
 0xef2   :  { %v1658_v12 = vsel %vm377_vm14, %v2576_v8, 0.0 }
 0xef5   :  { %v2578_v11 = vpop.eup %2577 }
 0xef6   :  { %v1661_v14 = vsel %vm377_vm14, %v2578_v11, 0.0 }
 0xef9   :  { %1294 = vrot.lane.b32.xlu0 %v3027_v16, %s2619_s14 }
 0xf14   :  { %1412 = vadd.xlane.f32.xlu1 %v1411_v0 }
 0xf18   :  { %1534 = vadd.xlane.f32.xlu0 %v1533_v9  ;;  %1537 = vadd.xlane.f32.xlu1 %v1536_v10 }
 0xf1c   :  { %1659 = vadd.xlane.f32.xlu0 %v1658_v12  ;;  %1662 = vadd.xlane.f32.xlu1 %v1661_v14 }
 0xf2d   :  { %1544 = vrot.lane.b32.xlu1 %v3027_v16, %s2620_s15 }
 0xf32   :  { %1669 = vrot.lane.b32.xlu0 %v3027_v16, %s2621_s16 }
 0xf64   :  { %v1285_v15 = vpop.xlane.xlu0 %1284 }
 0xf65   :  { %2579 = vrcp.f32 %v1285_v15 }
 0xf68   :  { %v1288_v7 = vpop.xlane.xlu1 %1287 }
 0xf69   :  { %2581 = vrcp.f32 %v1288_v7 }
 0xf6c   :  { %v1410_v17 = vpop.xlane.xlu0 %1409  ;;  %v1420_v2 = vpop.permute.xlu1 %1419 }
 0xf6d   :  { %2583 = vrcp.f32 %v1410_v17 }
 0xf70   :  { %v1295_v18 = vpop.permute.xlu0 %1294 }
 0xf71   :  { %2370 = vmatpush3.bf16.msra.mxu1 %v1295_v18 }
 0xf72   :  { %2381 = vmatprep.subr.bf16.mxu1 %v2609_v3  ;;  %v2580_v19 = vpop.eup %2579 }
 0xf73   :  { %v1291_v22 = vmul.f32 %v2580_v19, %v2564_v34 }
 0xf76   :  { %v2582_v21 = vpop.eup %2581 }
 0xf77   :  { %v1292_v23 = vmul.f32 %v2582_v21, %v2566_v31 }
 0xf79   :  { %v1293_v24 = vpack.c.bf16 %v1292_v23, %v1291_v22 }
 0xf7a   :  { %v2584_v26 = vpop.eup %2583 }
 0xf7b   :  { %2372 = vmatmul.mubr.msk.bf16.vlgmr.msra.gmra.mxu1 %vm377_vm14, %v1293_v24  ;;  %v1416_v34 = vmul.f32 %v2584_v26, %v3086_v35 }
 0xf7c   :  { %2382 = vmatpush3.bf16.msra.mxu1 %v1420_v2  ;;  %2383 = vmatprep.mubr.msk.bf16.mxu1 %vm2610_vm12, %v2609_v3 }
 0xf7d   :  { %2393 = vmatprep.subr.bf16.mxu1 %v2609_v3 }
 0xf9d   :  { %v1413_v16 = vpop.xlane.xlu1 %1412 }
 0xf9e   :  { %2585 = vrcp.f32 %v1413_v16 }
 0xfa1   :  { %v1535_v25 = vpop.xlane.xlu0 %1534  ;;  %v1538_v27 = vpop.xlane.xlu1 %1537 }
 0xfa2   :  { %2587 = vrcp.f32 %v1535_v25 }
 0xfa3   :  { %2589 = vrcp.f32 %v1538_v27 }
 0xfa5   :  { %v1660_v29 = vpop.xlane.xlu0 %1659  ;;  %v1663_v30 = vpop.xlane.xlu1 %1662 }
 0xfa6   :  { %2591 = vrcp.f32 %v1660_v29 }
 0xfa7   :  { %2593 = vrcp.f32 %v1663_v30 }
 0xfa9   :  { %v1545_v38 = vpop.permute.xlu1 %1544  ;;  %v1670_v46 = vpop.permute.xlu0 %1669 }
 0xfab   :  { %v2586_v32 = vpop.eup %2585 }
 0xfac   :  { %v1417_v36 = vmul.f32 %v2586_v32, %v2570_v63 }
 0xfae   :  { %v1418_v31 = vpack.c.bf16 %v1417_v36, %v1416_v34 }
 0xfaf   :  { %v2588_v37 = vpop.eup %2587 }
 0xfb0   :  { %v2590_v33 = vpop.eup %2589  ;;  %2384 = vmatmul.mubr.msk.bf16.vlgmr.msra.gmra.mxu1 %vm377_vm14, %v1418_v31  ;;  %v1541_v41 = vmul.f32 %v2588_v37, %v2572_v55 }
 0xfb1   :  { %2394 = vmatpush3.bf16.msra.mxu1 %v1545_v38  ;;  %2395 = vmatprep.mubr.msk.bf16.mxu1 %vm2610_vm12, %v2609_v3  ;;  %v1542_v42 = vmul.f32 %v2590_v33, %v2574_v61 }
 0xfb2   :  { %2405 = vmatprep.subr.bf16.mxu1 %v2609_v3 }
 0xfb3   :  { %v2592_v43 = vpop.eup %2591  ;;  %v1543_v40 = vpack.c.bf16 %v1542_v42, %v1541_v41 }
 0xfb4   :  { %v2594_v45 = vpop.eup %2593  ;;  %v1666_v35 = vmul.f32 %v2592_v43, %v2576_v8 }
 0xfb5   :  { %v1667_v48 = vmul.f32 %v2594_v45, %v2578_v11 }
 0xfb7   :  { %v1668_v54 = vpack.c.bf16 %v1667_v48, %v1666_v35 }
 0xfb8   :  { %2396 = vmatmul.mubr.msk.bf16.vlgmr.msra.gmra.mxu1 %vm377_vm14, %v1543_v40 }
 0xfb9   :  { %2406 = vmatpush3.bf16.msra.mxu1 %v1670_v46  ;;  %2407 = vmatprep.mubr.msk.bf16.mxu1 %vm2610_vm12, %v2609_v3 }
 0xfba   :  { %2419 = vmatprep.subr.bf16.mxu1 %v2609_v3 }
 0xfc0   :  { %2408 = vmatmul.mubr.msk.bf16.vlgmr.msra.gmra.mxu1 %vm377_vm14, %v1668_v54 }
 0xfc1   :  { %2420 = vmatpush3.bf16.msra.mxu1 %v2921_v4  ;;  %2423 = vmatprep.mubr.msk.bf16.mxu1 %vm2610_vm12, %v2609_v3 }
 0xfc2   :  { %2421 = vmatprep.subr.bf16.mxu1 %v2609_v3 }
 0xfc5   :  { %2422 = vmatpush3.bf16.msra.mxu1 %v2927_v28 }
 0xfc6   :  { %2439 = vmatprep.subr.bf16.mxu1 %v2609_v3 }
0x103b   :  { %v1334_v47 = vpop.f32.mrf.mxu1 }
0x103d   :  { %v2373_v56 = vpop.f32.mrf.mxu1 }
0x103f   :  { %v1337_v57 = vpop.f32.mrf.mxu1 }
0x1041   :  { %v2374_v58 = vpop.f32.mrf.mxu1 }
0x1070   :  { %v1459_v59 = vpop.f32.mrf.mxu1 }
0x1072   :  { %v2385_v62 = vpop.f32.mrf.mxu1 }
0x1074   :  { %v1462_v63 = vpop.f32.mrf.mxu1 }
0x1075   :  { %v2486_v55 = vpack.i.bf16 %v1462_v63, %v1459_v59 }
0x1076   :  { %v2386_v0 = vpop.f32.mrf.mxu1 }
0x1077   :  { %2487 = vrot.lane.b32.xlu1 %v2486_v55, %s2622_s18 }
0x1078   :  { %v1584_v4 = vpop.f32.mrf.mxu1 }
0x107a   :  { %v2397_v61 = vpop.f32.mrf.mxu1 }
0x107c   :  { %v1587_v8 = vpop.f32.mrf.mxu1 }
0x107d   :  { %v2491_v9 = vpack.i.bf16 %v1587_v8, %v1584_v4 }
0x107e   :  { %v2398_v10 = vpop.f32.mrf.mxu1 }
0x107f   :  { %2492 = vrot.lane.b32.xlu0 %v2491_v9, %s2623_s20 }
0x1080   :  { %v1709_v28 = vpop.f32.mrf.mxu1 }
0x1082   :  { %v2409_v11 = vpop.f32.mrf.mxu1 }
0x1084   :  { %v1712_v12 = vpop.f32.mrf.mxu1 }
0x1085   :  { %v2496_v14 = vpack.i.bf16 %v1712_v12, %v1709_v28 }
0x1086   :  { %v2410_v15 = vpop.f32.mrf.mxu1 }
0x1087   :  { %2497 = vrot.lane.b32.xlu1 %v2496_v14, %s2624_s21 }
0x10e9   :  { %v2488_v7 = vpop.permute.xlu1 %2487 }
0x10ea   :  { %v2490_v18 = vunpack.i.h.bf16 %v2488_v7  ;;  %v2489_v19 = vunpack.i.l.bf16 %v2488_v7 }
0x10ec   :  { %v1741_v24 = vsel %vm325_vm13, %v1337_v57, %v2490_v18  ;;  %v1740_v2 = vsel %vm325_vm13, %v1334_v47, %v2489_v19 }
0x10f1   :  { %v2493_v17 = vpop.permute.xlu0 %2492 }
0x10f2   :  { %v2495_v21 = vunpack.i.h.bf16 %v2493_v17  ;;  %v2494_v22 = vunpack.i.l.bf16 %v2493_v17 }
0x10f4   :  { %v1743_v27 = vsel %vm377_vm14, %v1741_v24, %v2495_v21  ;;  %v1742_v29 = vsel %vm377_vm14, %v1740_v2, %v2494_v22 }
0x10f9   :  { %v2498_v23 = vpop.permute.xlu1 %2497 }
0x10fa   :  { %v2500_v16 = vunpack.i.h.bf16 %v2498_v23  ;;  %v2499_v25 = vunpack.i.l.bf16 %v2498_v23 }
0x10fc   :  { %v1745_v30 = vsel %vm851_vm15, %v1743_v27, %v2500_v16  ;;  %v1744_v26 = vsel %vm851_vm15, %v1742_v29, %v2499_v25 }
0x10fd   :  { %v1746_v32 = vpack.c.bf16 %v1745_v30, %v1744_v26 }
0x10ff   :  { %2416 = vmatmul.mubr.msk.bf16.vlgmr.msra.gmra.mxu0 %vm215_vm11, %v1746_v32 }
0x1100   :  { %2428 = vmatpush3.bf16.msra.mxu0 %v2956_v49  ;;  %2435 = vmatprep.mubr.msk.bf16.mxu0 %vm2610_vm12, %v2609_v3 }
0x1101   :  { %2429 = vmatprep.subr.bf16.mxu0 %v2609_v3 }
0x1104   :  { %2430 = vmatpush3.bf16.msra.mxu0 %v2963_v50 }
0x1105   :  { %2431 = vmatprep.subr.bf16.mxu0 %v2609_v3 }
0x1108   :  { %2432 = vmatpush3.bf16.msra.mxu0 %v2970_v51 }
0x1109   :  { %2433 = vmatprep.subr.bf16.mxu0 %v2609_v3 }
0x110c   :  { %2434 = vmatpush3.bf16.msra.mxu0 %v2977_v52 }
0x11bf   :  { %v1784_v34 = vpop.f32.mrf.mxu0 }
0x11c0   :  { %v1785_v36 = vadd.f32 %v2908_v5, %v1784_v34 }
0x11c1   :  { %v2417_v31 = vpop.f32.mrf.mxu0 }
0x11c2   :  { %v1791_v49 = vadd.f32 %v1785_v36, %v3015_v1 }
0x11c3   :  { %v1787_v37 = vpop.f32.mrf.mxu0 }
0x11c4   :  { %v1788_v33 = vadd.f32 %v2908_v5, %v1787_v37  ;;  %v1793_v38 = vsel %vm215_vm11, %v1791_v49, 0.0 }
0x11c5   :  { %1794 = vadd.xlane.f32.xlu0 %v1793_v38  ;;  %v2418_v50 = vpop.f32.mrf.mxu0 }
0x11c6   :  { %v1792_v41 = vadd.f32 %v1788_v33, %v3018_v6 }
0x11c8   :  { %v1796_v51 = vsel %vm215_vm11, %v1792_v41, 0.0 }
0x11c9   :  { %1797 = vadd.xlane.f32.xlu1 %v1796_v51 }
0x124e   :  { %v1795_v42 = vpop.xlane.xlu0 %1794 }
0x124f   :  { %v1799_v52 = vmul.f32 0.03125, %v1795_v42 }
0x1251   :  { %v1801_v43 = vsub.f32 %v1791_v49, %v1799_v52 }
0x1252   :  { %v1798_v40 = vpop.xlane.xlu1 %1797 }
0x1253   :  { %v1800_v45 = vmul.f32 0.03125, %v1798_v40  ;;  %v1803_v46 = vmul.f32 %v1801_v43, %v1801_v43 }
0x1255   :  { %v1802_v35 = vsub.f32 %v1792_v41, %v1800_v45  ;;  %v1805_v1 = vsel %vm215_vm11, %v1803_v46, 0.0 }
0x1256   :  { %1806 = vadd.xlane.f32.xlu0 %v1805_v1 }
0x1257   :  { %v1804_v5 = vmul.f32 %v1802_v35, %v1802_v35 }
0x1259   :  { %v1808_v48 = vsel %vm215_vm11, %v1804_v5, 0.0 }
0x125a   :  { %1809 = vadd.xlane.f32.xlu0 %v1808_v48  ;;  %v2511_v48 = vld [vmem:[%s3202_s5 + $0x58] sm:$0xff]  }
0x12df   :  { %v1807_v54 = vpop.xlane.xlu0 %1806 }
0x12e0   :  { %v1811_v47 = vmul.f32 0.03125, %v1807_v54  ;;  %v2512_v54 = vld [vmem:[%s3202_s5 + $0x50] sm:$0xff]  }
0x12e2   :  { %v1813_v6 = vadd.f32 1e-12, %v1811_v47 }
0x12e3   :  { %v1810_v56 = vpop.xlane.xlu0 %1809 }
0x12e4   :  { %2595 = vrsqrt.f32 %v1813_v6  ;;  %v1812_v57 = vmul.f32 0.03125, %v1810_v56 }
0x12e6   :  { %v1814_v58 = vadd.f32 1e-12, %v1812_v57 }
0x12e8   :  { %2597 = vrsqrt.f32 %v1814_v58 }
0x12f1   :  { %v2596_v59 = vpop.eup %2595 }
0x12f2   :  { %v1817_v62 = vmul.f32 %v2596_v59, %v1801_v43 }
0x12f4   :  { %v1819_v0 = vmul.f32 %v2935_v39, %v1817_v62 }
0x12f5   :  { %v2598_v63 = vpop.eup %2597 }
0x12f6   :  { %v1818_v55 = vmul.f32 %v2598_v63, %v1802_v35  ;;  %v1821_v61 = vadd.f32 %v2941_v44, %v1819_v0 }
0x12f8   :  { %v1820_v4 = vmul.f32 %v2935_v39, %v1818_v55 }
0x12fa   :  { %v1822_v8 = vadd.f32 %v2941_v44, %v1820_v4 }
0x12fc   :  { %v1823_v9 = vpack.c.bf16 %v1822_v8, %v1821_v61 }
0x12fe   :  { %2424 = vmatmul.mubr.msk.bf16.vlgmr.msra.gmra.mxu1 %vm215_vm11, %v1823_v9 }
0x12ff   :  { %2443 = vmatprep.mubr.msk.bf16.mxu1 %vm2610_vm12, %v2609_v3  ;;  %2440 = vmatpush3.bf16.msra.mxu1 %v2511_v48 }
0x1300   :  { %2441 = vmatprep.subr.bf16.mxu1 %v2609_v3 }
0x1303   :  { %2442 = vmatpush3.bf16.msra.mxu1 %v2512_v54 }
0x1304   :  { %2447 = vmatprep.subr.bf16.mxu1 %v2609_v3 }
0x13be   :  { %v1861_v10 = vpop.f32.mrf.mxu1 }
0x13bf   :  { %v1862_v28 = vadd.f32 %v2984_v53, %v1861_v10 }
0x13c0   :  { %v2425_v11 = vpop.f32.mrf.mxu1 }
0x13c1   :  { %v1868_v12 = vmul.f32 %v1862_v28, %v1862_v28 }
0x13c2   :  { %v1864_v14 = vpop.f32.mrf.mxu1 }
0x13c3   :  { %v1870_v15 = vmul.f32 %v1868_v12, %v1862_v28  ;;  %v1865_v7 = vadd.f32 %v2984_v53, %v1864_v14  ;;  %v2513_v12 = vld [vmem:[%s3202_s5 + $0x68] sm:$0xff]  }
0x13c4   :  { %v2426_v39 = vpop.f32.mrf.mxu1 }
0x13c5   :  { %v1872_v17 = vmul.f32 0.044715, %v1870_v15  ;;  %v1869_v18 = vmul.f32 %v1865_v7, %v1865_v7 }
0x13c7   :  { %v1874_v19 = vadd.f32 %v1872_v17, %v1862_v28  ;;  %v1871_v44 = vmul.f32 %v1869_v18, %v1865_v7 }
0x13c9   :  { %v1876_v21 = vmul.f32 0.7978846, %v1874_v19  ;;  %v1873_v22 = vmul.f32 0.044715, %v1871_v44 }
0x13cb   :  { %2599 = vtanh.f32 %v1876_v21  ;;  %v1875_v23 = vadd.f32 %v1873_v22, %v1865_v7 }
0x13cd   :  { %v1877_v24 = vmul.f32 0.7978846, %v1875_v23 }
0x13cf   :  { %2601 = vtanh.f32 %v1877_v24 }
0x13d8   :  { %v2600_v2 = vpop.eup %2599 }
0x13d9   :  { %v1880_v16 = vadd.f32 1.0, %v2600_v2 }
0x13db   :  { %v1882_v27 = vmul.f32 0.5, %v1880_v16 }
0x13dc   :  { %v2602_v25 = vpop.eup %2601 }
0x13dd   :  { %v1881_v29 = vadd.f32 1.0, %v2602_v25  ;;  %v1884_v26 = vmul.f32 %v1882_v27, %v1862_v28 }
0x13df   :  { %v1883_v30 = vmul.f32 0.5, %v1881_v29 }
0x13e1   :  { %v1885_v32 = vmul.f32 %v1883_v30, %v1865_v7 }
0x13e3   :  { %v1886_v53 = vpack.c.bf16 %v1885_v32, %v1884_v26 }
0x13e5   :  { %2436 = vmatmul.mubr.msk.bf16.vlgmr.msra.gmra.mxu0 %vm1084_vm0, %v1886_v53 }
0x14a5   :  { %v1924_v34 = vpop.f32.mrf.mxu0 }
0x14a6   :  { %v1925_v36 = vadd.f32 %v2994_v20, %v1924_v34 }
0x14a7   :  { %v2437_v31 = vpop.f32.mrf.mxu0 }
0x14a8   :  { %v1931_v49 = vadd.f32 %v1925_v36, %v1821_v61 }
0x14a9   :  { %v1927_v37 = vpop.f32.mrf.mxu0 }
0x14aa   :  { %v1928_v33 = vadd.f32 %v2994_v20, %v1927_v37  ;;  %v1933_v38 = vsel %vm215_vm11, %v1931_v49, 0.0 }
0x14ab   :  { %1934 = vadd.xlane.f32.xlu0 %v1933_v38  ;;  %v2438_v50 = vpop.f32.mrf.mxu0 }
0x14ac   :  { %v1932_v41 = vadd.f32 %v1928_v33, %v1822_v8 }
0x14ae   :  { %v1936_v51 = vsel %vm215_vm11, %v1932_v41, 0.0 }
0x14af   :  { %1937 = vadd.xlane.f32.xlu1 %v1936_v51 }
0x1534   :  { %v1935_v42 = vpop.xlane.xlu0 %1934 }
0x1535   :  { %v1939_v52 = vmul.f32 0.03125, %v1935_v42 }
0x1537   :  { %v1941_v43 = vsub.f32 %v1931_v49, %v1939_v52 }
0x1538   :  { %v1938_v40 = vpop.xlane.xlu1 %1937 }
0x1539   :  { %v1940_v45 = vmul.f32 0.03125, %v1938_v40  ;;  %v1943_v46 = vmul.f32 %v1941_v43, %v1941_v43 }
0x153b   :  { %v1942_v35 = vsub.f32 %v1932_v41, %v1940_v45  ;;  %v1945_v1 = vsel %vm215_vm11, %v1943_v46, 0.0 }
0x153c   :  { %1946 = vadd.xlane.f32.xlu0 %v1945_v1 }
0x153d   :  { %v1944_v5 = vmul.f32 %v1942_v35, %v1942_v35 }
0x153f   :  { %v1948_v20 = vsel %vm215_vm11, %v1944_v5, 0.0 }
0x1540   :  { %1949 = vadd.xlane.f32.xlu1 %v1948_v20 }
0x15c5   :  { %v1947_v47 = vpop.xlane.xlu0 %1946 }
0x15c6   :  { %v1951_v6 = vmul.f32 0.03125, %v1947_v47 }
0x15c8   :  { %v1953_v56 = vadd.f32 1e-12, %v1951_v6 }
0x15c9   :  { %v1950_v57 = vpop.xlane.xlu1 %1949 }
0x15ca   :  { %2603 = vrsqrt.f32 %v1953_v56  ;;  %v1952_v58 = vmul.f32 0.03125, %v1950_v57 }
0x15cc   :  { %v1954_v59 = vadd.f32 1e-12, %v1952_v58 }
0x15ce   :  { %2605 = vrsqrt.f32 %v1954_v59 }
0x15d7   :  { %v2604_v62 = vpop.eup %2603 }
0x15d8   :  { %v1957_v63 = vmul.f32 %v2604_v62, %v1941_v43 }
0x15da   :  { %v1959_v4 = vmul.f32 %v3005_v60, %v1957_v63 }
0x15db   :  { %v2606_v55 = vpop.eup %2605 }
0x15dc   :  { %v1958_v0 = vmul.f32 %v2606_v55, %v1942_v35  ;;  %v1961_v9 = vadd.f32 %v3011_v13, %v1959_v4 }
0x15de   :  { %v1960_v61 = vmul.f32 %v3005_v60, %v1958_v0  ;;  %v2514_v60 = vld [vmem:[%s3202_s5 + $0x60] sm:$0xff]  }
0x15e0   :  { %v1962_v8 = vadd.f32 %v3011_v13, %v1960_v61  ;;  %v2162_v13 = vld [vmem:[%s3203_s4 + $0xa] ss:$0 sm:$0xff] }
0x15e2   :  { %v1964_v10 = vrot.slane %v1962_v8, 7 }
0x15e4   :  { %v1967_v28 = vsel %vm1966_vm1, %v1961_v9, %v1964_v10 }
0x15e5   :  { %v1968_v11 = vpack.c.bf16 %v1967_v28, %v1967_v28 }
0x15e7   :  { %2444 = vmatmul.mubr.msk.bf16.vlgmr.msra.gmra.mxu1 %vm215_vm11, %v1968_v11 }
0x15e8   :  { %2451 = vmatprep.mubr.msk.bf16.mxu1 %vm2610_vm12, %v2609_v3  ;;  %2448 = vmatpush3.bf16.msra.mxu1 %v2513_v12 }
0x15e9   :  { %2449 = vmatprep.subr.bf16.mxu1 %v2609_v3  ;;  %v2166_v3 = vld [vmem:[%s3203_s4 + $0xb] ss:$0 sm:$0xff] }
0x15ec   :  { %2450 = vmatpush3.bf16.msra.mxu1 %v2514_v60 }
0x16a7   :  { %v2027_v14 = vpop.f32.mrf.mxu1 }
0x16a8   :  { %v2028_v15 = vadd.f32 %v2162_v13, %v2027_v14 }
0x16a9   :  { %v2445_v7 = vpop.f32.mrf.mxu1 }
0x16aa   :  { %2607 = vtanh.f32 %v2028_v15 }
0x16ab   :  { %v2030_v39 = vpop.f32.mrf.mxu1 }
0x16ad   :  { %v2446_v17 = vpop.f32.mrf.mxu1 }
0x16b7   :  { %v2608_v18 = vpop.eup %2607 }
0x16b8   :  { %v2034_v19 = vpack.c.bf16 %v2608_v18, %v2608_v18 }
0x16ba   :  { %2452 = vmatmul.mubr.msk.bf16.vlgmr.msra.gmra.mxu1 %vm215_vm11, %v2034_v19 }
0x177a   :  { %v2093_v44 = vpop.f32.mrf.mxu1 }
0x177b   :  { %v2094_v21 = vadd.f32 %v2166_v3, %v2093_v44 }
0x177c   :  { %v2453_v22 = vpop.f32.mrf.mxu1 }
0x177d   :  { %2099 = vst [vmem:[%s3205_s6] sm:$0x3] %v2094_v21 }
0x177e   :  { %v2096_v23 = vpop.f32.mrf.mxu1 }
0x1780   :  { %v2454_v24 = vpop.f32.mrf.mxu1 }

</bundles_post_ra>
